<compile_context>
chip_gen: v7x
topology: tpu7x:2x2x1
jax: 0.10.0
libtpu: 0.0.40
codegen_flags: <defaults>
</compile_context>

<pallas_src>
import functools

import jax
import jax.numpy as jnp
import numpy as np
from jax import lax
from jax.experimental import pallas as pl
from jax.experimental.pallas import tpu as pltpu


def _round_up(x, m):
    return (x + m - 1) // m * m


# ---------------------------------------------------------------------------
# Kernel 1: recurrent LSTM cell, t_chunk timesteps per grid step.
# Gate columns are pre-permuted to [i | f | o | g] and zero-padded to Hp
# (multiple of 128), so the activations are one sigmoid over a lane-aligned
# 3*Hp slice plus one tanh over Hp.  The LSTM state is carried in the
# grid-resident h_out/c_out output blocks (written back to HBM once per
# batch block).
# ---------------------------------------------------------------------------
def lstm_chunk_kernel(xg_ref, h0_ref, c0_ref, w_hh_ref,
                      hs_ref, h_out_ref, c_out_ref,
                      *, t_chunk, seq_len, hidden_pad):
    chunk = pl.program_id(1)          # time-chunk axis (batch axis is axis 0)

    @pl.when(chunk == 0)
    def _():
        h_out_ref[...] = h0_ref[...]   # h0/c0 only consumed on the first chunk
        c_out_ref[...] = c0_ref[...]

    Hp = hidden_pad
    w_hh = w_hh_ref[...]               # (Hp, 4Hp), grid-resident weight

    def run_chunk(mask_tail):
        def step(t, carry):
            h, c = carry
            # Input projection precomputed outside; only the h-dependent
            # matmul sits on the serial critical path (bf16 operands,
            # f32 accumulation; gate math stays f32 for v5e's VPU/EUP).
            gates = xg_ref[t].astype(jnp.float32) + jnp.dot(
                h.astype(w_hh.dtype), w_hh,
                preferred_element_type=jnp.float32)
            ifo = jax.nn.sigmoid(gates[:, :3 * Hp])     # i|f|o in one launch
            g_g = jnp.tanh(gates[:, 3 * Hp:])
            i_g = ifo[:, 0 * Hp:1 * Hp]
            f_g = ifo[:, 1 * Hp:2 * Hp]
            o_g = ifo[:, 2 * Hp:3 * Hp]
            c_new = f_g * c + i_g * g_g
            h_new = o_g * jnp.tanh(c_new)
            if mask_tail:
                # Only compiled into the final chunk when T % t_chunk != 0.
                valid = (chunk * t_chunk + t) < seq_len
                h_new = jnp.where(valid, h_new, h)
                c_new = jnp.where(valid, c_new, c)
            hs_ref[t] = h_new.astype(hs_ref.dtype)
            return h_new, c_new

        h_fin, c_fin = lax.fori_loop(0, t_chunk, step,
                                     (h_out_ref[...], c_out_ref[...]),
                                     unroll=True)
        h_out_ref[...] = h_fin
        c_out_ref[...] = c_fin

    if seq_len % t_chunk == 0:
        run_chunk(mask_tail=False)        # no padded timesteps at all
    else:
        last = pl.num_programs(1) - 1

        @pl.when(chunk == last)           # masked body only in the last chunk
        def _():
            run_chunk(mask_tail=True)

        @pl.when(chunk != last)           # select-free body everywhere else
        def _():
            run_chunk(mask_tail=False)


# ---------------------------------------------------------------------------
# Kernel 2: non-recurrent MDN head over all rows at once.
# Output width is padded to Fp (multiple of 128) so stores are lane-dense;
# softmax/exp regions are selected with an iota column mask instead of a
# concatenate (no masked vst, no XLU shuffles).
# ---------------------------------------------------------------------------
def mdn_head_kernel(hs_ref, fc_w_ref, fc_b_ref, out_ref,
                    *, num_gaussians, gauss_out):
    fc = jnp.dot(hs_ref[...], fc_w_ref[...],
                 preferred_element_type=jnp.float32) + fc_b_ref[...]
    G, GO = num_gaussians, gauss_out
    col = lax.broadcasted_iota(jnp.int32, fc.shape, 1)
    is_pi = col < G
    is_sigma = jnp.logical_and(col >= G + GO, col < G + 2 * GO)

    # Softmax over the pi columns only.
    pi_logits = jnp.where(is_pi, fc, -jnp.inf)
    m = jnp.max(pi_logits, axis=-1, keepdims=True)
    e = jnp.where(is_pi, jnp.exp(fc - m), 0.0)
    pi = e / jnp.sum(e, axis=-1, keepdims=True)

    out_ref[...] = jnp.where(is_pi, pi,
                             jnp.where(is_sigma, jnp.exp(fc), fc))


# ---------------------------------------------------------------------------
# Weight prep helpers.
# ---------------------------------------------------------------------------
def _reorder_pad_gate_rows(w, H, Hp):
    """(4H, ...) rows in PyTorch gate order [i, f, g, o] -> (4*Hp, ...) rows in
    kernel order [i, f, o, g], each gate block zero-padded from H to Hp."""
    blocks = [w[0 * H:1 * H], w[1 * H:2 * H], w[3 * H:4 * H], w[2 * H:3 * H]]
    if Hp != H:
        pad = ((0, Hp - H),) + ((0, 0),) * (w.ndim - 1)
        blocks = [jnp.pad(b, pad) for b in blocks]
    return jnp.concatenate(blocks, axis=0)


# ---------------------------------------------------------------------------
# Wrapper: same semantics as MDNRNN.forward (batch_first LSTM + fc + split).
# ---------------------------------------------------------------------------
def mdn_rnn_forward(x, params, hidden=None, *, t_chunk=16, b_block=None,
                    compute_dtype=jnp.bfloat16):
    """x: [B, T, I].  Returns (pi [B,T,G], mu [B,T,G,O], sigma [B,T,G,O],
    (h [1,B,H], c [1,B,H]))."""
    B, T, I = x.shape
    H = params["w_hh"].shape[1]            # w_hh is (4H, H)
    G = params["num_gaussians"]
    O = params["output_size"]
    GO = G * O
    F = G * (2 * O + 1)

    Hp = _round_up(H, 128)                 # lane-aligned gate/hidden slices
    Fp = _round_up(F, 128)                 # lane-dense head output
    cdt = jnp.dtype(compute_dtype)
    isz = cdt.itemsize

    # Batch sharding (v7x megacore): b_block should be a multiple of 8, or B.
    b_blk = B if b_block is None else int(b_block)
    assert B % b_blk == 0, "b_block must divide the batch size"
    n_b = B // b_blk

    # ---- initial state, zero-padded to Hp ---------------------------------
    if hidden is None:
        h0 = jnp.zeros((B, Hp), jnp.float32)
        c0 = jnp.zeros((B, Hp), jnp.float32)
    else:
        h0 = jnp.pad(hidden[0].reshape(B, H).astype(jnp.float32),
                     ((0, 0), (0, Hp - H)))
        c0 = jnp.pad(hidden[1].reshape(B, H).astype(jnp.float32),
                     ((0, 0), (0, Hp - H)))

    # ---- weights: reorder gates to [i|f|o|g], zero-pad to Hp, cast ---------
    w_ih_r = _reorder_pad_gate_rows(params["w_ih"].astype(jnp.float32), H, Hp)
    w_hh_r = _reorder_pad_gate_rows(params["w_hh"].astype(jnp.float32), H, Hp)
    b_r = _reorder_pad_gate_rows(
        (params["b_ih"] + params["b_hh"]).astype(jnp.float32), H, Hp)
    w_ih_t = w_ih_r.T.astype(cdt)                                  # (I, 4Hp)
    w_hh_t = jnp.pad(w_hh_r, ((0, 0), (0, Hp - H))).T.astype(cdt)  # (Hp, 4Hp)

    fc_w_t = jnp.pad(params["fc_w"].astype(jnp.float32).T,
                     ((0, Hp - H), (0, Fp - F))).astype(cdt)       # (Hp, Fp)
    fc_b = jnp.pad(params["fc_b"].astype(jnp.float32),
                   (0, Fp - F)).reshape(1, Fp)                     # f32

    # ---- whole-sequence input projection (single-pass MXU, f32 accum) -----
    x_tm = jnp.transpose(x, (1, 0, 2)).astype(cdt)                 # [T, B, I]
    xg = (jnp.dot(x_tm.reshape(T * B, I), w_ih_t,
                  preferred_element_type=jnp.float32) + b_r)
    xg = xg.astype(cdt).reshape(T, B, 4 * Hp)                      # [T, B, 4Hp]

    # ---- t_chunk from a VMEM budget (double-buffered xg + hs blocks) ------
    per_step = b_blk * (4 * Hp + Hp) * isz
    t_cap = max(1, (24 * 1024 * 1024) // (2 * per_step))
    t_chunk = max(1, min(t_chunk, T, t_cap))
    T_pad = _round_up(T, t_chunk)
    if T_pad != T:
        xg = jnp.pad(xg, ((0, T_pad - T), (0, 0), (0, 0)))
    n_chunks = T_pad // t_chunk

    lstm_kernel = functools.partial(lstm_chunk_kernel, t_chunk=t_chunk,
                                    seq_len=T, hidden_pad=Hp)
    head_kernel = functools.partial(mdn_head_kernel,
                                    num_gaussians=G, gauss_out=GO)

    # ---- head tile: whole LSTM chunks of rows, 8-aligned, VMEM-capped -----
    m_total = T_pad * B
    rows_per_chunk = t_chunk * B
    cands = [rows_per_chunk * j for j in range(1, n_chunks + 1)
             if n_chunks % j == 0
             and ((rows_per_chunk * j) % 8 == 0 or rows_per_chunk * j == m_total)]
    tm_cap = max(8, (16 * 1024 * 1024) // (2 * (Hp * isz + Fp * 4)))
    fit = [c for c in cands if c <= tm_cap] or [min(cands)]
    target = min(2048, max(fit))
    TM = min(c for c in fit if c >= target)

    cparams_lstm = pltpu.CompilerParams(
        dimension_semantics=("parallel", "arbitrary"),
        vmem_limit_bytes=64 * 1024 * 1024)
    cparams_head = pltpu.CompilerParams(
        dimension_semantics=("parallel",),
        vmem_limit_bytes=64 * 1024 * 1024)

    def run(single_buffer_weights):
        # Grid-invariant weights: request a single VMEM buffer instead of the
        # default double buffer (matters for large H / f32 on v7x's 64 MiB).
        wkw = (dict(pipeline_mode=pl.Buffered(1))
               if single_buffer_weights else {})

        hs_tm, h_T, c_T = pl.pallas_call(
            lstm_kernel,
            out_shape=(
                jax.ShapeDtypeStruct((T_pad, B, Hp), cdt),     # hidden states
                jax.ShapeDtypeStruct((B, Hp), jnp.float32),    # h_T
                jax.ShapeDtypeStruct((B, Hp), jnp.float32),    # c_T
            ),
            grid_spec=pltpu.PrefetchScalarGridSpec(
                num_scalar_prefetch=0,
                grid=(n_b, n_chunks),
                in_specs=[
                    pl.BlockSpec((t_chunk, b_blk, 4 * Hp),
                                 lambda bi, ci: (ci, bi, 0)),            # xg
                    pl.BlockSpec((b_blk, Hp), lambda bi, ci: (bi, 0)),   # h0
                    pl.BlockSpec((b_blk, Hp), lambda bi, ci: (bi, 0)),   # c0
                    pl.BlockSpec((Hp, 4 * Hp), lambda bi, ci: (0, 0),
                                 **wkw),                                 # w_hh
                ],
                out_specs=[
                    pl.BlockSpec((t_chunk, b_blk, Hp),
                                 lambda bi, ci: (ci, bi, 0)),            # hs
                    pl.BlockSpec((b_blk, Hp), lambda bi, ci: (bi, 0)),   # h carry
                    pl.BlockSpec((b_blk, Hp), lambda bi, ci: (bi, 0)),   # c carry
                ],
            ),
            compiler_params=cparams_lstm,
        )(xg, h0, c0, w_hh_t)

        # Feed the head all T_pad*B rows directly (no slice / pad copies);
        # padded tail rows are computed and discarded in the wrapper.
        hs_flat = hs_tm.reshape(m_total, Hp)

        out_slab = pl.pallas_call(
            head_kernel,
            out_shape=jax.ShapeDtypeStruct((m_total, Fp), jnp.float32),
            grid_spec=pltpu.PrefetchScalarGridSpec(
                num_scalar_prefetch=0,
                grid=(m_total // TM,),
                in_specs=[
                    pl.BlockSpec((TM, Hp), lambda i: (i, 0)),            # hs
                    pl.BlockSpec((Hp, Fp), lambda i: (0, 0), **wkw),     # fc_w
                    pl.BlockSpec((1, Fp), lambda i: (0, 0), **wkw),      # fc_b
                ],
                out_specs=pl.BlockSpec((TM, Fp), lambda i: (i, 0)),
            ),
            compiler_params=cparams_head,
        )(hs_flat, fc_w_t, fc_b)

        return h_T, c_T, out_slab

    try:
        h_T, c_T, out_slab = run(single_buffer_weights=True)
    except Exception:
        # pl.Buffered(1) single-buffering not supported by this jax build;
        # fall back to default double-buffered weight windows.
        h_T, c_T, out_slab = run(single_buffer_weights=False)

    # ---- split padded slab back into the PyTorch layout --------------------
    out3 = out_slab.reshape(T_pad, B, Fp)[:T]                     # [T, B, Fp]
    pi = jnp.transpose(out3[..., :G], (1, 0, 2))                  # [B, T, G]
    mu = jnp.transpose(out3[..., G:G + GO], (1, 0, 2)).reshape(B, T, G, O)
    sigma = jnp.transpose(out3[..., G + GO:G + 2 * GO],
                          (1, 0, 2)).reshape(B, T, G, O)
    hidden_out = (h_T[:, :H][None, :, :], c_T[:, :H][None, :, :])
    return pi, mu, sigma, hidden_out


# ---------------------------------------------------------------------------
# Pure-JAX reference (lax.scan LSTM) for correctness checking.
# ---------------------------------------------------------------------------
def mdn_rnn_reference(x, params, hidden=None):
    B, T, I = x.shape
    H = params["w_hh"].shape[1]
    G = params["num_gaussians"]
    O = params["output_size"]

    w_ih, w_hh = params["w_ih"], params["w_hh"]
    b = params["b_ih"] + params["b_hh"]
    fc_w, fc_b = params["fc_w"], params["fc_b"]

    if hidden is None:
        h0 = jnp.zeros((B, H), jnp.float32)
        c0 = jnp.zeros((B, H), jnp.float32)
    else:
        h0 = hidden[0].reshape(B, H)
        c0 = hidden[1].reshape(B, H)

    def step(carry, x_t):
        h, c = carry
        gates = jnp.dot(x_t, w_ih.T) + jnp.dot(h, w_hh.T) + b
        i_g = jax.nn.sigmoid(gates[:, 0 * H:1 * H])
        f_g = jax.nn.sigmoid(gates[:, 1 * H:2 * H])
        g_g = jnp.tanh(gates[:, 2 * H:3 * H])
        o_g = jax.nn.sigmoid(gates[:, 3 * H:4 * H])
        c_t = f_g * c + i_g * g_g
        h_t = o_g * jnp.tanh(c_t)
        return (h_t, c_t), h_t

    (h_T, c_T), hs = lax.scan(step, (h0, c0), jnp.transpose(x, (1, 0, 2)))
    hs = jnp.transpose(hs, (1, 0, 2))                        # [B, T, H]
    out = jnp.dot(hs, fc_w.T) + fc_b                         # [B, T, F]
    pi = jax.nn.softmax(out[..., :G], axis=-1)
    mu = out[..., G:G + G * O].reshape(B, T, G, O)
    sigma = jnp.exp(out[..., G + G * O:]).reshape(B, T, G, O)
    return pi, mu, sigma, (h_T[None], c_T[None])


def init_params(key, input_size, hidden_size, num_gaussians, output_size):
    F = num_gaussians * (2 * output_size + 1)
    ks = jax.random.split(key, 6)
    s = 1.0 / np.sqrt(hidden_size)
    return {
        "w_ih": jax.random.uniform(ks[0], (4 * hidden_size, input_size),
                                   jnp.float32, -s, s),
        "w_hh": jax.random.uniform(ks[1], (4 * hidden_size, hidden_size),
                                   jnp.float32, -s, s),
        "b_ih": jax.random.uniform(ks[2], (4 * hidden_size,),
                                   jnp.float32, -s, s),
        "b_hh": jax.random.uniform(ks[3], (4 * hidden_size,),
                                   jnp.float32, -s, s),
        "fc_w": jax.random.uniform(ks[4], (F, hidden_size),
                                   jnp.float32, -s, s),
        "fc_b": jax.random.uniform(ks[5], (F,), jnp.float32, -s, s),
        "num_gaussians": num_gaussians,
        "output_size": output_size,
    }


if __name__ == "__main__":
    def check(got, want, name, rtol, atol):
        np.testing.assert_allclose(np.asarray(got, dtype=np.float32),
                                   np.asarray(want, dtype=np.float32),
                                   rtol=rtol, atol=atol, err_msg=name)

    key = jax.random.PRNGKey(0)

    # Case 1: f32 compute path (structural check), zero hidden state,
    #         T divisible by t_chunk, H not 128-aligned (exercises padding).
    B, T, I, H, G, O = 2, 8, 16, 32, 5, 3
    k_x, k_p, k_h, k_c, k2 = jax.random.split(key, 5)
    x = jax.random.normal(k_x, (B, T, I), jnp.float32)
    params = init_params(k_p, I, H, G, O)

    pi, mu, sigma, (h_T, c_T) = mdn_rnn_forward(
        x, params, t_chunk=4, compute_dtype=jnp.float32)
    jax.block_until_ready((pi, mu, sigma, h_T, c_T))
    pr, mr, sr, (hr, cr) = mdn_rnn_reference(x, params)
    assert pi.shape == (B, T, G)
    assert mu.shape == (B, T, G, O) and sigma.shape == (B, T, G, O)
    assert h_T.shape == (1, B, H) and c_T.shape == (1, B, H)
    for got, want, name in [(pi, pr, "pi"), (mu, mr, "mu"),
                            (sigma, sr, "sigma"),
                            (h_T, hr, "h_T"), (c_T, cr, "c_T")]:
        check(got, want, name, rtol=5e-2, atol=2e-2)

    # Case 2: bf16 compute path, explicit hidden state, ragged T
    #         (T % t_chunk != 0 exercises the final-chunk masking).
    h0 = 0.1 * jax.random.normal(k_h, (1, B, H), jnp.float32)
    c0 = 0.1 * jax.random.normal(k_c, (1, B, H), jnp.float32)
    pi2, mu2, sigma2, (h2, c2) = mdn_rnn_forward(
        x, params, hidden=(h0, c0), t_chunk=3, compute_dtype=jnp.bfloat16)
    jax.block_until_ready((pi2, mu2, sigma2, h2, c2))
    p2r, m2r, s2r, (h2r, c2r) = mdn_rnn_reference(x, params, hidden=(h0, c0))
    for got, want, name in [(pi2, p2r, "pi2"), (mu2, m2r, "mu2"),
                            (sigma2, s2r, "sigma2"),
                            (h2, h2r, "h2"), (c2, c2r, "c2")]:
        check(got, want, name, rtol=1e-1, atol=5e-2)

    # Case 3: 128-aligned hidden size, batch=8 (no H padding, 8-row sublane
    #         blocks), default bf16 compute path.
    B3, T3, I3, H3, G3, O3 = 8, 12, 20, 128, 4, 4
    k_x3, k_p3 = jax.random.split(k2)
    x3 = jax.random.normal(k_x3, (B3, T3, I3), jnp.float32)
    params3 = init_params(k_p3, I3, H3, G3, O3)
    pi3, mu3, sigma3, (h3, c3) = mdn_rnn_forward(
        x3, params3, t_chunk=4, compute_dtype=jnp.bfloat16)
    jax.block_until_ready((pi3, mu3, sigma3, h3, c3))
    p3r, m3r, s3r, (h3r, c3r) = mdn_rnn_reference(x3, params3)
    for got, want, name in [(pi3, p3r, "pi3"), (mu3, m3r, "mu3"),
                            (sigma3, s3r, "sigma3"),
                            (h3, h3r, "h3"), (c3, c3r, "c3")]:
        check(got, want, name, rtol=2e-1, atol=1e-1)

    print("KERNEL_OK")
</pallas_src>

<mosaic_0001>
module attributes {stable_mosaic.version = 11 : i64} {
  func.func @lstm_chunk_kernel(%arg0: i32, %arg1: i32, %arg2: memref<4x2x512xf32, #tpu.memory_space<vmem>>, %arg3: memref<2x128xf32, #tpu.memory_space<vmem>>, %arg4: memref<2x128xf32, #tpu.memory_space<vmem>>, %arg5: memref<128x512xf32, #tpu.memory_space<vmem>>, %arg6: memref<4x2x128xf32, #tpu.memory_space<vmem>>, %arg7: memref<2x128xf32, #tpu.memory_space<vmem>>, %arg8: memref<2x128xf32, #tpu.memory_space<vmem>>) attributes {dimension_semantics = [#tpu.dimension_semantics<parallel>, #tpu.dimension_semantics<arbitrary>], iteration_bounds = array<i64: 1, 2>, scalar_prefetch = 0 : i64, scratch_operands = 0 : i64, tpu.core_type = #tpu.core_type<tc>, window_params = [{transform_indices = @transform_0, window_bounds = array<i64: 4, 2, 512>}, {transform_indices = @transform_1, window_bounds = array<i64: 2, 128>}, {transform_indices = @transform_2, window_bounds = array<i64: 2, 128>}, {pipeline_mode = #tpu.pipeline_mode<synchronous>, transform_indices = @transform_3, window_bounds = array<i64: 128, 512>}, {transform_indices = @transform_4, window_bounds = array<i64: 4, 2, 128>}, {transform_indices = @transform_5, window_bounds = array<i64: 2, 128>}, {transform_indices = @transform_6, window_bounds = array<i64: 2, 128>}]} {
    %c0_i32 = arith.constant 0 : i32
    %0 = arith.cmpi eq, %arg1, %c0_i32 : i32
    %1 = arith.extui %0 : i1 to i32
    %c0_i32_0 = arith.constant 0 : i32
    %2 = arith.cmpi ne, %1, %c0_i32_0 : i32
    scf.if %2 {
      %c0_34 = arith.constant 0 : index
      %c0_35 = arith.constant 0 : index
      %108 = vector.load %arg3[%c0_34, %c0_35] : memref<2x128xf32, #tpu.memory_space<vmem>>, vector<2x128xf32>
      %c0_36 = arith.constant 0 : index
      %c0_37 = arith.constant 0 : index
      %109 = vector.load %arg7[%c0_36, %c0_37] : memref<2x128xf32, #tpu.memory_space<vmem>>, vector<2x128xf32>
      tpu.vector_store %arg7[%c0_36, %c0_37], %108 {strides = array<i32>} : memref<2x128xf32, #tpu.memory_space<vmem>>, vector<2x128xf32>,
      %c0_38 = arith.constant 0 : index
      %c0_39 = arith.constant 0 : index
      %110 = vector.load %arg4[%c0_38, %c0_39] : memref<2x128xf32, #tpu.memory_space<vmem>>, vector<2x128xf32>
      %c0_40 = arith.constant 0 : index
      %c0_41 = arith.constant 0 : index
      %111 = vector.load %arg8[%c0_40, %c0_41] : memref<2x128xf32, #tpu.memory_space<vmem>>, vector<2x128xf32>
      tpu.vector_store %arg8[%c0_40, %c0_41], %110 {strides = array<i32>} : memref<2x128xf32, #tpu.memory_space<vmem>>, vector<2x128xf32>,
    } else {
    }
    %c0 = arith.constant 0 : index
    %c0_1 = arith.constant 0 : index
    %3 = vector.load %arg5[%c0, %c0_1] : memref<128x512xf32, #tpu.memory_space<vmem>>, vector<128x512xf32>
    %c0_2 = arith.constant 0 : index
    %c0_3 = arith.constant 0 : index
    %4 = vector.load %arg7[%c0_2, %c0_3] : memref<2x128xf32, #tpu.memory_space<vmem>>, vector<2x128xf32>
    %c0_4 = arith.constant 0 : index
    %c0_5 = arith.constant 0 : index
    %5 = vector.load %arg8[%c0_4, %c0_5] : memref<2x128xf32, #tpu.memory_space<vmem>>, vector<2x128xf32>
    %c0_i32_6 = arith.constant 0 : i32
    %6 = arith.index_cast %c0_i32_6 : i32 to index
    %c0_7 = arith.constant 0 : index
    %c0_8 = arith.constant 0 : index
    %7 = vector.load %arg2[%6, %c0_7, %c0_8] : memref<4x2x512xf32, #tpu.memory_space<vmem>>, vector<1x2x512xf32>
    %8 = vector.shape_cast %7 : vector<1x2x512xf32> to vector<2x512xf32>
    %cst = arith.constant dense<0.000000e+00> : vector<2x512xf32>
    %9 = tpu.matmul %4, %3, %cst {dimension_numbers = #tpu.dot_dimension_numbers<[1], [0], [0], [1], [0, 0, 1, 1], [], []>} : vector<2x128xf32>, vector<128x512xf32>, vector<2x512xf32> -> vector<2x512xf32>
    %10 = arith.addf %8, %9 : vector<2x512xf32>
    %11 = vector.extract_strided_slice %10 {offsets = [0, 0], sizes = [2, 384], strides = [1, 1]} : vector<2x512xf32> to vector<2x384xf32>
    %12 = arith.negf %11 : vector<2x384xf32>
    %13 = math.exp %12 : vector<2x384xf32>
    %cst_9 = arith.constant 1.000000e+00 : f32
    %14 = vector.broadcast %cst_9 : f32 to vector<2x384xf32>
    %15 = arith.addf %14, %13 : vector<2x384xf32>
    %16 = arith.divf %14, %15 : vector<2x384xf32>
    %17 = vector.extract_strided_slice %10 {offsets = [0, 384], sizes = [2, 128], strides = [1, 1]} : vector<2x512xf32> to vector<2x128xf32>
    %18 = math.tanh %17 : vector<2x128xf32>
    %19 = vector.extract_strided_slice %16 {offsets = [0, 0], sizes = [2, 128], strides = [1, 1]} : vector<2x384xf32> to vector<2x128xf32>
    %20 = vector.extract_strided_slice %16 {offsets = [0, 128], sizes = [2, 128], strides = [1, 1]} : vector<2x384xf32> to vector<2x128xf32>
    %21 = vector.extract_strided_slice %16 {offsets = [0, 256], sizes = [2, 128], strides = [1, 1]} : vector<2x384xf32> to vector<2x128xf32>
    %22 = arith.mulf %20, %5 : vector<2x128xf32>
    %23 = arith.mulf %19, %18 : vector<2x128xf32>
    %24 = arith.addf %22, %23 : vector<2x128xf32>
    %25 = math.tanh %24 : vector<2x128xf32>
    %26 = arith.mulf %21, %25 : vector<2x128xf32>
    %27 = arith.index_cast %c0_i32_6 : i32 to index
    %c0_10 = arith.constant 0 : index
    %c0_11 = arith.constant 0 : index
    %28 = vector.load %arg6[%27, %c0_10, %c0_11] : memref<4x2x128xf32, #tpu.memory_space<vmem>>, vector<1x2x128xf32>
    %29 = vector.shape_cast %28 : vector<1x2x128xf32> to vector<2x128xf32>
    %30 = vector.shape_cast %26 : vector<2x128xf32> to vector<1x2x128xf32>
    tpu.vector_store %arg6[%27, %c0_10, %c0_11], %30 {strides = array<i32>} : memref<4x2x128xf32, #tpu.memory_space<vmem>>, vector<1x2x128xf32>,
    %c1_i32 = arith.constant 1 : i32
    %31 = arith.index_cast %c1_i32 : i32 to index
    %c0_12 = arith.constant 0 : index
    %c0_13 = arith.constant 0 : index
    %32 = vector.load %arg2[%31, %c0_12, %c0_13] : memref<4x2x512xf32, #tpu.memory_space<vmem>>, vector<1x2x512xf32>
    %33 = vector.shape_cast %32 : vector<1x2x512xf32> to vector<2x512xf32>
    %cst_14 = arith.constant dense<0.000000e+00> : vector<2x512xf32>
    %34 = tpu.matmul %26, %3, %cst_14 {dimension_numbers = #tpu.dot_dimension_numbers<[1], [0], [0], [1], [0, 0, 1, 1], [], []>} : vector<2x128xf32>, vector<128x512xf32>, vector<2x512xf32> -> vector<2x512xf32>
    %35 = arith.addf %33, %34 : vector<2x512xf32>
    %36 = vector.extract_strided_slice %35 {offsets = [0, 0], sizes = [2, 384], strides = [1, 1]} : vector<2x512xf32> to vector<2x384xf32>
    %37 = arith.negf %36 : vector<2x384xf32>
    %38 = math.exp %37 : vector<2x384xf32>
    %cst_15 = arith.constant 1.000000e+00 : f32
    %39 = vector.broadcast %cst_15 : f32 to vector<2x384xf32>
    %40 = arith.addf %39, %38 : vector<2x384xf32>
    %41 = arith.divf %39, %40 : vector<2x384xf32>
    %42 = vector.extract_strided_slice %35 {offsets = [0, 384], sizes = [2, 128], strides = [1, 1]} : vector<2x512xf32> to vector<2x128xf32>
    %43 = math.tanh %42 : vector<2x128xf32>
    %44 = vector.extract_strided_slice %41 {offsets = [0, 0], sizes = [2, 128], strides = [1, 1]} : vector<2x384xf32> to vector<2x128xf32>
    %45 = vector.extract_strided_slice %41 {offsets = [0, 128], sizes = [2, 128], strides = [1, 1]} : vector<2x384xf32> to vector<2x128xf32>
    %46 = vector.extract_strided_slice %41 {offsets = [0, 256], sizes = [2, 128], strides = [1, 1]} : vector<2x384xf32> to vector<2x128xf32>
    %47 = arith.mulf %45, %24 : vector<2x128xf32>
    %48 = arith.mulf %44, %43 : vector<2x128xf32>
    %49 = arith.addf %47, %48 : vector<2x128xf32>
    %50 = math.tanh %49 : vector<2x128xf32>
    %51 = arith.mulf %46, %50 : vector<2x128xf32>
    %52 = arith.index_cast %c1_i32 : i32 to index
    %c0_16 = arith.constant 0 : index
    %c0_17 = arith.constant 0 : index
    %53 = vector.load %arg6[%52, %c0_16, %c0_17] : memref<4x2x128xf32, #tpu.memory_space<vmem>>, vector<1x2x128xf32>
    %54 = vector.shape_cast %53 : vector<1x2x128xf32> to vector<2x128xf32>
    %55 = vector.shape_cast %51 : vector<2x128xf32> to vector<1x2x128xf32>
    tpu.vector_store %arg6[%52, %c0_16, %c0_17], %55 {strides = array<i32>} : memref<4x2x128xf32, #tpu.memory_space<vmem>>, vector<1x2x128xf32>,
    %c2_i32 = arith.constant 2 : i32
    %56 = arith.index_cast %c2_i32 : i32 to index
    %c0_18 = arith.constant 0 : index
    %c0_19 = arith.constant 0 : index
    %57 = vector.load %arg2[%56, %c0_18, %c0_19] : memref<4x2x512xf32, #tpu.memory_space<vmem>>, vector<1x2x512xf32>
    %58 = vector.shape_cast %57 : vector<1x2x512xf32> to vector<2x512xf32>
    %cst_20 = arith.constant dense<0.000000e+00> : vector<2x512xf32>
    %59 = tpu.matmul %51, %3, %cst_20 {dimension_numbers = #tpu.dot_dimension_numbers<[1], [0], [0], [1], [0, 0, 1, 1], [], []>} : vector<2x128xf32>, vector<128x512xf32>, vector<2x512xf32> -> vector<2x512xf32>
    %60 = arith.addf %58, %59 : vector<2x512xf32>
    %61 = vector.extract_strided_slice %60 {offsets = [0, 0], sizes = [2, 384], strides = [1, 1]} : vector<2x512xf32> to vector<2x384xf32>
    %62 = arith.negf %61 : vector<2x384xf32>
    %63 = math.exp %62 : vector<2x384xf32>
    %cst_21 = arith.constant 1.000000e+00 : f32
    %64 = vector.broadcast %cst_21 : f32 to vector<2x384xf32>
    %65 = arith.addf %64, %63 : vector<2x384xf32>
    %66 = arith.divf %64, %65 : vector<2x384xf32>
    %67 = vector.extract_strided_slice %60 {offsets = [0, 384], sizes = [2, 128], strides = [1, 1]} : vector<2x512xf32> to vector<2x128xf32>
    %68 = math.tanh %67 : vector<2x128xf32>
    %69 = vector.extract_strided_slice %66 {offsets = [0, 0], sizes = [2, 128], strides = [1, 1]} : vector<2x384xf32> to vector<2x128xf32>
    %70 = vector.extract_strided_slice %66 {offsets = [0, 128], sizes = [2, 128], strides = [1, 1]} : vector<2x384xf32> to vector<2x128xf32>
    %71 = vector.extract_strided_slice %66 {offsets = [0, 256], sizes = [2, 128], strides = [1, 1]} : vector<2x384xf32> to vector<2x128xf32>
    %72 = arith.mulf %70, %49 : vector<2x128xf32>
    %73 = arith.mulf %69, %68 : vector<2x128xf32>
    %74 = arith.addf %72, %73 : vector<2x128xf32>
    %75 = math.tanh %74 : vector<2x128xf32>
    %76 = arith.mulf %71, %75 : vector<2x128xf32>
    %77 = arith.index_cast %c2_i32 : i32 to index
    %c0_22 = arith.constant 0 : index
    %c0_23 = arith.constant 0 : index
    %78 = vector.load %arg6[%77, %c0_22, %c0_23] : memref<4x2x128xf32, #tpu.memory_space<vmem>>, vector<1x2x128xf32>
    %79 = vector.shape_cast %78 : vector<1x2x128xf32> to vector<2x128xf32>
    %80 = vector.shape_cast %76 : vector<2x128xf32> to vector<1x2x128xf32>
    tpu.vector_store %arg6[%77, %c0_22, %c0_23], %80 {strides = array<i32>} : memref<4x2x128xf32, #tpu.memory_space<vmem>>, vector<1x2x128xf32>,
    %c3_i32 = arith.constant 3 : i32
    %81 = arith.index_cast %c3_i32 : i32 to index
    %c0_24 = arith.constant 0 : index
    %c0_25 = arith.constant 0 : index
    %82 = vector.load %arg2[%81, %c0_24, %c0_25] : memref<4x2x512xf32, #tpu.memory_space<vmem>>, vector<1x2x512xf32>
    %83 = vector.shape_cast %82 : vector<1x2x512xf32> to vector<2x512xf32>
    %cst_26 = arith.constant dense<0.000000e+00> : vector<2x512xf32>
    %84 = tpu.matmul %76, %3, %cst_26 {dimension_numbers = #tpu.dot_dimension_numbers<[1], [0], [0], [1], [0, 0, 1, 1], [], []>} : vector<2x128xf32>, vector<128x512xf32>, vector<2x512xf32> -> vector<2x512xf32>
    %85 = arith.addf %83, %84 : vector<2x512xf32>
    %86 = vector.extract_strided_slice %85 {offsets = [0, 0], sizes = [2, 384], strides = [1, 1]} : vector<2x512xf32> to vector<2x384xf32>
    %87 = arith.negf %86 : vector<2x384xf32>
    %88 = math.exp %87 : vector<2x384xf32>
    %cst_27 = arith.constant 1.000000e+00 : f32
    %89 = vector.broadcast %cst_27 : f32 to vector<2x384xf32>
    %90 = arith.addf %89, %88 : vector<2x384xf32>
    %91 = arith.divf %89, %90 : vector<2x384xf32>
    %92 = vector.extract_strided_slice %85 {offsets = [0, 384], sizes = [2, 128], strides = [1, 1]} : vector<2x512xf32> to vector<2x128xf32>
    %93 = math.tanh %92 : vector<2x128xf32>
    %94 = vector.extract_strided_slice %91 {offsets = [0, 0], sizes = [2, 128], strides = [1, 1]} : vector<2x384xf32> to vector<2x128xf32>
    %95 = vector.extract_strided_slice %91 {offsets = [0, 128], sizes = [2, 128], strides = [1, 1]} : vector<2x384xf32> to vector<2x128xf32>
    %96 = vector.extract_strided_slice %91 {offsets = [0, 256], sizes = [2, 128], strides = [1, 1]} : vector<2x384xf32> to vector<2x128xf32>
    %97 = arith.mulf %95, %74 : vector<2x128xf32>
    %98 = arith.mulf %94, %93 : vector<2x128xf32>
    %99 = arith.addf %97, %98 : vector<2x128xf32>
    %100 = math.tanh %99 : vector<2x128xf32>
    %101 = arith.mulf %96, %100 : vector<2x128xf32>
    %102 = arith.index_cast %c3_i32 : i32 to index
    %c0_28 = arith.constant 0 : index
    %c0_29 = arith.constant 0 : index
    %103 = vector.load %arg6[%102, %c0_28, %c0_29] : memref<4x2x128xf32, #tpu.memory_space<vmem>>, vector<1x2x128xf32>
    %104 = vector.shape_cast %103 : vector<1x2x128xf32> to vector<2x128xf32>
    %105 = vector.shape_cast %101 : vector<2x128xf32> to vector<1x2x128xf32>
    tpu.vector_store %arg6[%102, %c0_28, %c0_29], %105 {strides = array<i32>} : memref<4x2x128xf32, #tpu.memory_space<vmem>>, vector<1x2x128xf32>,
    %c4_i32 = arith.constant 4 : i32
    %c0_30 = arith.constant 0 : index
    %c0_31 = arith.constant 0 : index
    %106 = vector.load %arg7[%c0_30, %c0_31] : memref<2x128xf32, #tpu.memory_space<vmem>>, vector<2x128xf32>
    tpu.vector_store %arg7[%c0_30, %c0_31], %101 {strides = array<i32>} : memref<2x128xf32, #tpu.memory_space<vmem>>, vector<2x128xf32>,
    %c0_32 = arith.constant 0 : index
    %c0_33 = arith.constant 0 : index
    %107 = vector.load %arg8[%c0_32, %c0_33] : memref<2x128xf32, #tpu.memory_space<vmem>>, vector<2x128xf32>
    tpu.vector_store %arg8[%c0_32, %c0_33], %99 {strides = array<i32>} : memref<2x128xf32, #tpu.memory_space<vmem>>, vector<2x128xf32>,
    return
  }
  func.func @transform_0(%arg0: i32, %arg1: i32) -> (i32, i32, i32) {
    %c0_i32 = arith.constant 0 : i32
    %c0_i32_0 = arith.constant 0 : i32
    return %arg1, %arg0, %c0_i32 : i32, i32, i32
  }
  func.func @transform_1(%arg0: i32, %arg1: i32) -> (i32, i32) {
    %c0_i32 = arith.constant 0 : i32
    %c0_i32_0 = arith.constant 0 : i32
    return %arg0, %c0_i32 : i32, i32
  }
  func.func @transform_2(%arg0: i32, %arg1: i32) -> (i32, i32) {
    %c0_i32 = arith.constant 0 : i32
    %c0_i32_0 = arith.constant 0 : i32
    return %arg0, %c0_i32 : i32, i32
  }
  func.func @transform_3(%arg0: i32, %arg1: i32) -> (i32, i32) {
    %c0_i32 = arith.constant 0 : i32
    %c0_i32_0 = arith.constant 0 : i32
    %c0_i32_1 = arith.constant 0 : i32
    return %c0_i32, %c0_i32_0 : i32, i32
  }
  func.func @transform_4(%arg0: i32, %arg1: i32) -> (i32, i32, i32) {
    %c0_i32 = arith.constant 0 : i32
    %c0_i32_0 = arith.constant 0 : i32
    return %arg1, %arg0, %c0_i32 : i32, i32, i32
  }
  func.func @transform_5(%arg0: i32, %arg1: i32) -> (i32, i32) {
    %c0_i32 = arith.constant 0 : i32
    %c0_i32_0 = arith.constant 0 : i32
    return %arg0, %c0_i32 : i32, i32
  }
  func.func @transform_6(%arg0: i32, %arg1: i32) -> (i32, i32) {
    %c0_i32 = arith.constant 0 : i32
    %c0_i32_0 = arith.constant 0 : i32
    return %arg0, %c0_i32 : i32, i32
  }
}

module attributes {stable_mosaic.version = 11 : i64} {
  func.func @lstm_chunk_kernel(%arg0: i32, %arg1: i32, %arg2: memref<4x2x512xf32, #tpu.memory_space<vmem>>, %arg3: memref<2x128xf32, #tpu.memory_space<vmem>>, %arg4: memref<2x128xf32, #tpu.memory_space<vmem>>, %arg5: memref<128x512xf32, #tpu.memory_space<vmem>>, %arg6: memref<4x2x128xf32, #tpu.memory_space<vmem>>, %arg7: memref<2x128xf32, #tpu.memory_space<vmem>>, %arg8: memref<2x128xf32, #tpu.memory_space<vmem>>) attributes {dimension_semantics = [#tpu.dimension_semantics<parallel>, #tpu.dimension_semantics<arbitrary>], iteration_bounds = array<i64: 1, 2>, scalar_prefetch = 0 : i64, scratch_operands = 0 : i64, tpu.core_type = #tpu.core_type<tc>, window_params = [{transform_indices = @transform_0, window_bounds = array<i64: 4, 2, 512>}, {transform_indices = @transform_1, window_bounds = array<i64: 2, 128>}, {transform_indices = @transform_2, window_bounds = array<i64: 2, 128>}, {pipeline_mode = #tpu.pipeline_mode<synchronous>, transform_indices = @transform_3, window_bounds = array<i64: 128, 512>}, {transform_indices = @transform_4, window_bounds = array<i64: 4, 2, 128>}, {transform_indices = @transform_5, window_bounds = array<i64: 2, 128>}, {transform_indices = @transform_6, window_bounds = array<i64: 2, 128>}]} {
    %c0_i32 = arith.constant 0 : i32
    %0 = arith.cmpi eq, %arg1, %c0_i32 : i32
    %1 = arith.extui %0 : i1 to i32
    %c0_i32_0 = arith.constant 0 : i32
    %2 = arith.cmpi ne, %1, %c0_i32_0 : i32
    scf.if %2 {
      %c0_34 = arith.constant 0 : index
      %c0_35 = arith.constant 0 : index
      %108 = vector.load %arg3[%c0_34, %c0_35] : memref<2x128xf32, #tpu.memory_space<vmem>>, vector<2x128xf32>
      %c0_36 = arith.constant 0 : index
      %c0_37 = arith.constant 0 : index
      %109 = vector.load %arg7[%c0_36, %c0_37] : memref<2x128xf32, #tpu.memory_space<vmem>>, vector<2x128xf32>
      tpu.vector_store %arg7[%c0_36, %c0_37], %108 {strides = array<i32>} : memref<2x128xf32, #tpu.memory_space<vmem>>, vector<2x128xf32>,
      %c0_38 = arith.constant 0 : index
      %c0_39 = arith.constant 0 : index
      %110 = vector.load %arg4[%c0_38, %c0_39] : memref<2x128xf32, #tpu.memory_space<vmem>>, vector<2x128xf32>
      %c0_40 = arith.constant 0 : index
      %c0_41 = arith.constant 0 : index
      %111 = vector.load %arg8[%c0_40, %c0_41] : memref<2x128xf32, #tpu.memory_space<vmem>>, vector<2x128xf32>
      tpu.vector_store %arg8[%c0_40, %c0_41], %110 {strides = array<i32>} : memref<2x128xf32, #tpu.memory_space<vmem>>, vector<2x128xf32>,
    } else {
    }
    %c0 = arith.constant 0 : index
    %c0_1 = arith.constant 0 : index
    %3 = vector.load %arg5[%c0, %c0_1] : memref<128x512xf32, #tpu.memory_space<vmem>>, vector<128x512xf32>
    %c0_2 = arith.constant 0 : index
    %c0_3 = arith.constant 0 : index
    %4 = vector.load %arg7[%c0_2, %c0_3] : memref<2x128xf32, #tpu.memory_space<vmem>>, vector<2x128xf32>
    %c0_4 = arith.constant 0 : index
    %c0_5 = arith.constant 0 : index
    %5 = vector.load %arg8[%c0_4, %c0_5] : memref<2x128xf32, #tpu.memory_space<vmem>>, vector<2x128xf32>
    %c0_i32_6 = arith.constant 0 : i32
    %6 = arith.index_cast %c0_i32_6 : i32 to index
    %c0_7 = arith.constant 0 : index
    %c0_8 = arith.constant 0 : index
    %7 = vector.load %arg2[%6, %c0_7, %c0_8] : memref<4x2x512xf32, #tpu.memory_space<vmem>>, vector<1x2x512xf32>
    %8 = vector.shape_cast %7 : vector<1x2x512xf32> to vector<2x512xf32>
    %cst = arith.constant dense<0.000000e+00> : vector<2x512xf32>
    %9 = tpu.matmul %4, %3, %cst {dimension_numbers = #tpu.dot_dimension_numbers<[1], [0], [0], [1], [0, 0, 1, 1], [], []>} : vector<2x128xf32>, vector<128x512xf32>, vector<2x512xf32> -> vector<2x512xf32>
    %10 = arith.addf %8, %9 : vector<2x512xf32>
    %11 = vector.extract_strided_slice %10 {offsets = [0, 0], sizes = [2, 384], strides = [1, 1]} : vector<2x512xf32> to vector<2x384xf32>
    %12 = arith.negf %11 : vector<2x384xf32>
    %13 = math.exp %12 : vector<2x384xf32>
    %cst_9 = arith.constant 1.000000e+00 : f32
    %14 = vector.broadcast %cst_9 : f32 to vector<2x384xf32>
    %15 = arith.addf %14, %13 : vector<2x384xf32>
    %16 = arith.divf %14, %15 : vector<2x384xf32>
    %17 = vector.extract_strided_slice %10 {offsets = [0, 384], sizes = [2, 128], strides = [1, 1]} : vector<2x512xf32> to vector<2x128xf32>
    %18 = math.tanh %17 : vector<2x128xf32>
    %19 = vector.extract_strided_slice %16 {offsets = [0, 0], sizes = [2, 128], strides = [1, 1]} : vector<2x384xf32> to vector<2x128xf32>
    %20 = vector.extract_strided_slice %16 {offsets = [0, 128], sizes = [2, 128], strides = [1, 1]} : vector<2x384xf32> to vector<2x128xf32>
    %21 = vector.extract_strided_slice %16 {offsets = [0, 256], sizes = [2, 128], strides = [1, 1]} : vector<2x384xf32> to vector<2x128xf32>
    %22 = arith.mulf %20, %5 : vector<2x128xf32>
    %23 = arith.mulf %19, %18 : vector<2x128xf32>
    %24 = arith.addf %22, %23 : vector<2x128xf32>
    %25 = math.tanh %24 : vector<2x128xf32>
    %26 = arith.mulf %21, %25 : vector<2x128xf32>
    %27 = arith.index_cast %c0_i32_6 : i32 to index
    %c0_10 = arith.constant 0 : index
    %c0_11 = arith.constant 0 : index
    %28 = vector.load %arg6[%27, %c0_10, %c0_11] : memref<4x2x128xf32, #tpu.memory_space<vmem>>, vector<1x2x128xf32>
    %29 = vector.shape_cast %28 : vector<1x2x128xf32> to vector<2x128xf32>
    %30 = vector.shape_cast %26 : vector<2x128xf32> to vector<1x2x128xf32>
    tpu.vector_store %arg6[%27, %c0_10, %c0_11], %30 {strides = array<i32>} : memref<4x2x128xf32, #tpu.memory_space<vmem>>, vector<1x2x128xf32>,
    %c1_i32 = arith.constant 1 : i32
    %31 = arith.index_cast %c1_i32 : i32 to index
    %c0_12 = arith.constant 0 : index
    %c0_13 = arith.constant 0 : index
    %32 = vector.load %arg2[%31, %c0_12, %c0_13] : memref<4x2x512xf32, #tpu.memory_space<vmem>>, vector<1x2x512xf32>
    %33 = vector.shape_cast %32 : vector<1x2x512xf32> to vector<2x512xf32>
    %cst_14 = arith.constant dense<0.000000e+00> : vector<2x512xf32>
    %34 = tpu.matmul %26, %3, %cst_14 {dimension_numbers = #tpu.dot_dimension_numbers<[1], [0], [0], [1], [0, 0, 1, 1], [], []>} : vector<2x128xf32>, vector<128x512xf32>, vector<2x512xf32> -> vector<2x512xf32>
    %35 = arith.addf %33, %34 : vector<2x512xf32>
    %36 = vector.extract_strided_slice %35 {offsets = [0, 0], sizes = [2, 384], strides = [1, 1]} : vector<2x512xf32> to vector<2x384xf32>
    %37 = arith.negf %36 : vector<2x384xf32>
    %38 = math.exp %37 : vector<2x384xf32>
    %cst_15 = arith.constant 1.000000e+00 : f32
    %39 = vector.broadcast %cst_15 : f32 to vector<2x384xf32>
    %40 = arith.addf %39, %38 : vector<2x384xf32>
    %41 = arith.divf %39, %40 : vector<2x384xf32>
    %42 = vector.extract_strided_slice %35 {offsets = [0, 384], sizes = [2, 128], strides = [1, 1]} : vector<2x512xf32> to vector<2x128xf32>
    %43 = math.tanh %42 : vector<2x128xf32>
    %44 = vector.extract_strided_slice %41 {offsets = [0, 0], sizes = [2, 128], strides = [1, 1]} : vector<2x384xf32> to vector<2x128xf32>
    %45 = vector.extract_strided_slice %41 {offsets = [0, 128], sizes = [2, 128], strides = [1, 1]} : vector<2x384xf32> to vector<2x128xf32>
    %46 = vector.extract_strided_slice %41 {offsets = [0, 256], sizes = [2, 128], strides = [1, 1]} : vector<2x384xf32> to vector<2x128xf32>
    %47 = arith.mulf %45, %24 : vector<2x128xf32>
    %48 = arith.mulf %44, %43 : vector<2x128xf32>
    %49 = arith.addf %47, %48 : vector<2x128xf32>
    %50 = math.tanh %49 : vector<2x128xf32>
    %51 = arith.mulf %46, %50 : vector<2x128xf32>
    %52 = arith.index_cast %c1_i32 : i32 to index
    %c0_16 = arith.constant 0 : index
    %c0_17 = arith.constant 0 : index
    %53 = vector.load %arg6[%52, %c0_16, %c0_17] : memref<4x2x128xf32, #tpu.memory_space<vmem>>, vector<1x2x128xf32>
    %54 = vector.shape_cast %53 : vector<1x2x128xf32> to vector<2x128xf32>
    %55 = vector.shape_cast %51 : vector<2x128xf32> to vector<1x2x128xf32>
    tpu.vector_store %arg6[%52, %c0_16, %c0_17], %55 {strides = array<i32>} : memref<4x2x128xf32, #tpu.memory_space<vmem>>, vector<1x2x128xf32>,
    %c2_i32 = arith.constant 2 : i32
    %56 = arith.index_cast %c2_i32 : i32 to index
    %c0_18 = arith.constant 0 : index
    %c0_19 = arith.constant 0 : index
    %57 = vector.load %arg2[%56, %c0_18, %c0_19] : memref<4x2x512xf32, #tpu.memory_space<vmem>>, vector<1x2x512xf32>
    %58 = vector.shape_cast %57 : vector<1x2x512xf32> to vector<2x512xf32>
    %cst_20 = arith.constant dense<0.000000e+00> : vector<2x512xf32>
    %59 = tpu.matmul %51, %3, %cst_20 {dimension_numbers = #tpu.dot_dimension_numbers<[1], [0], [0], [1], [0, 0, 1, 1], [], []>} : vector<2x128xf32>, vector<128x512xf32>, vector<2x512xf32> -> vector<2x512xf32>
    %60 = arith.addf %58, %59 : vector<2x512xf32>
    %61 = vector.extract_strided_slice %60 {offsets = [0, 0], sizes = [2, 384], strides = [1, 1]} : vector<2x512xf32> to vector<2x384xf32>
    %62 = arith.negf %61 : vector<2x384xf32>
    %63 = math.exp %62 : vector<2x384xf32>
    %cst_21 = arith.constant 1.000000e+00 : f32
    %64 = vector.broadcast %cst_21 : f32 to vector<2x384xf32>
    %65 = arith.addf %64, %63 : vector<2x384xf32>
    %66 = arith.divf %64, %65 : vector<2x384xf32>
    %67 = vector.extract_strided_slice %60 {offsets = [0, 384], sizes = [2, 128], strides = [1, 1]} : vector<2x512xf32> to vector<2x128xf32>
    %68 = math.tanh %67 : vector<2x128xf32>
    %69 = vector.extract_strided_slice %66 {offsets = [0, 0], sizes = [2, 128], strides = [1, 1]} : vector<2x384xf32> to vector<2x128xf32>
    %70 = vector.extract_strided_slice %66 {offsets = [0, 128], sizes = [2, 128], strides = [1, 1]} : vector<2x384xf32> to vector<2x128xf32>
    %71 = vector.extract_strided_slice %66 {offsets = [0, 256], sizes = [2, 128], strides = [1, 1]} : vector<2x384xf32> to vector<2x128xf32>
    %72 = arith.mulf %70, %49 : vector<2x128xf32>
    %73 = arith.mulf %69, %68 : vector<2x128xf32>
    %74 = arith.addf %72, %73 : vector<2x128xf32>
    %75 = math.tanh %74 : vector<2x128xf32>
    %76 = arith.mulf %71, %75 : vector<2x128xf32>
    %77 = arith.index_cast %c2_i32 : i32 to index
    %c0_22 = arith.constant 0 : index
    %c0_23 = arith.constant 0 : index
    %78 = vector.load %arg6[%77, %c0_22, %c0_23] : memref<4x2x128xf32, #tpu.memory_space<vmem>>, vector<1x2x128xf32>
    %79 = vector.shape_cast %78 : vector<1x2x128xf32> to vector<2x128xf32>
    %80 = vector.shape_cast %76 : vector<2x128xf32> to vector<1x2x128xf32>
    tpu.vector_store %arg6[%77, %c0_22, %c0_23], %80 {strides = array<i32>} : memref<4x2x128xf32, #tpu.memory_space<vmem>>, vector<1x2x128xf32>,
    %c3_i32 = arith.constant 3 : i32
    %81 = arith.index_cast %c3_i32 : i32 to index
    %c0_24 = arith.constant 0 : index
    %c0_25 = arith.constant 0 : index
    %82 = vector.load %arg2[%81, %c0_24, %c0_25] : memref<4x2x512xf32, #tpu.memory_space<vmem>>, vector<1x2x512xf32>
    %83 = vector.shape_cast %82 : vector<1x2x512xf32> to vector<2x512xf32>
    %cst_26 = arith.constant dense<0.000000e+00> : vector<2x512xf32>
    %84 = tpu.matmul %76, %3, %cst_26 {dimension_numbers = #tpu.dot_dimension_numbers<[1], [0], [0], [1], [0, 0, 1, 1], [], []>} : vector<2x128xf32>, vector<128x512xf32>, vector<2x512xf32> -> vector<2x512xf32>
    %85 = arith.addf %83, %84 : vector<2x512xf32>
    %86 = vector.extract_strided_slice %85 {offsets = [0, 0], sizes = [2, 384], strides = [1, 1]} : vector<2x512xf32> to vector<2x384xf32>
    %87 = arith.negf %86 : vector<2x384xf32>
    %88 = math.exp %87 : vector<2x384xf32>
    %cst_27 = arith.constant 1.000000e+00 : f32
    %89 = vector.broadcast %cst_27 : f32 to vector<2x384xf32>
    %90 = arith.addf %89, %88 : vector<2x384xf32>
    %91 = arith.divf %89, %90 : vector<2x384xf32>
    %92 = vector.extract_strided_slice %85 {offsets = [0, 384], sizes = [2, 128], strides = [1, 1]} : vector<2x512xf32> to vector<2x128xf32>
    %93 = math.tanh %92 : vector<2x128xf32>
    %94 = vector.extract_strided_slice %91 {offsets = [0, 0], sizes = [2, 128], strides = [1, 1]} : vector<2x384xf32> to vector<2x128xf32>
    %95 = vector.extract_strided_slice %91 {offsets = [0, 128], sizes = [2, 128], strides = [1, 1]} : vector<2x384xf32> to vector<2x128xf32>
    %96 = vector.extract_strided_slice %91 {offsets = [0, 256], sizes = [2, 128], strides = [1, 1]} : vector<2x384xf32> to vector<2x128xf32>
    %97 = arith.mulf %95, %74 : vector<2x128xf32>
    %98 = arith.mulf %94, %93 : vector<2x128xf32>
    %99 = arith.addf %97, %98 : vector<2x128xf32>
    %100 = math.tanh %99 : vector<2x128xf32>
    %101 = arith.mulf %96, %100 : vector<2x128xf32>
    %102 = arith.index_cast %c3_i32 : i32 to index
    %c0_28 = arith.constant 0 : index
    %c0_29 = arith.constant 0 : index
    %103 = vector.load %arg6[%102, %c0_28, %c0_29] : memref<4x2x128xf32, #tpu.memory_space<vmem>>, vector<1x2x128xf32>
    %104 = vector.shape_cast %103 : vector<1x2x128xf32> to vector<2x128xf32>
    %105 = vector.shape_cast %101 : vector<2x128xf32> to vector<1x2x128xf32>
    tpu.vector_store %arg6[%102, %c0_28, %c0_29], %105 {strides = array<i32>} : memref<4x2x128xf32, #tpu.memory_space<vmem>>, vector<1x2x128xf32>,
    %c4_i32 = arith.constant 4 : i32
    %c0_30 = arith.constant 0 : index
    %c0_31 = arith.constant 0 : index
    %106 = vector.load %arg7[%c0_30, %c0_31] : memref<2x128xf32, #tpu.memory_space<vmem>>, vector<2x128xf32>
    tpu.vector_store %arg7[%c0_30, %c0_31], %101 {strides = array<i32>} : memref<2x128xf32, #tpu.memory_space<vmem>>, vector<2x128xf32>,
    %c0_32 = arith.constant 0 : index
    %c0_33 = arith.constant 0 : index
    %107 = vector.load %arg8[%c0_32, %c0_33] : memref<2x128xf32, #tpu.memory_space<vmem>>, vector<2x128xf32>
    tpu.vector_store %arg8[%c0_32, %c0_33], %99 {strides = array<i32>} : memref<2x128xf32, #tpu.memory_space<vmem>>, vector<2x128xf32>,
    return
  }
  func.func @transform_0(%arg0: i32, %arg1: i32) -> (i32, i32, i32) {
    %c0_i32 = arith.constant 0 : i32
    %c0_i32_0 = arith.constant 0 : i32
    return %arg1, %arg0, %c0_i32 : i32, i32, i32
  }
  func.func @transform_1(%arg0: i32, %arg1: i32) -> (i32, i32) {
    %c0_i32 = arith.constant 0 : i32
    %c0_i32_0 = arith.constant 0 : i32
    return %arg0, %c0_i32 : i32, i32
  }
  func.func @transform_2(%arg0: i32, %arg1: i32) -> (i32, i32) {
    %c0_i32 = arith.constant 0 : i32
    %c0_i32_0 = arith.constant 0 : i32
    return %arg0, %c0_i32 : i32, i32
  }
  func.func @transform_3(%arg0: i32, %arg1: i32) -> (i32, i32) {
    %c0_i32 = arith.constant 0 : i32
    %c0_i32_0 = arith.constant 0 : i32
    %c0_i32_1 = arith.constant 0 : i32
    return %c0_i32, %c0_i32_0 : i32, i32
  }
  func.func @transform_4(%arg0: i32, %arg1: i32) -> (i32, i32, i32) {
    %c0_i32 = arith.constant 0 : i32
    %c0_i32_0 = arith.constant 0 : i32
    return %arg1, %arg0, %c0_i32 : i32, i32, i32
  }
  func.func @transform_5(%arg0: i32, %arg1: i32) -> (i32, i32) {
    %c0_i32 = arith.constant 0 : i32
    %c0_i32_0 = arith.constant 0 : i32
    return %arg0, %c0_i32 : i32, i32
  }
  func.func @transform_6(%arg0: i32, %arg1: i32) -> (i32, i32) {
    %c0_i32 = arith.constant 0 : i32
    %c0_i32_0 = arith.constant 0 : i32
    return %arg0, %c0_i32 : i32, i32
  }
}

</mosaic_0001>

<bundles_post_ra>
// kernel: tpu_custom_call.1
= control target key start
LH: loop header
LB: loop body
LE: loop exit
PB: predicated region body
PF: predicated region fallthrough
CT: control target
= control target key end

     0   :  { %12 = vsyncpa [#allocation3], 0  ;;  %s2674_s0 = inlined_call_operand.hbm [shape: f32[8,2,512], index: 0, kind: input, shape index: {}]   ;;  %s2675_s1 = inlined_call_operand.hbm [shape: f32[2,128], index: 1, kind: input, shape index: {}]   ;;  %s2676_s2 = inlined_call_operand.hbm [shape: f32[2,128], index: 2, kind: input, shape index: {}]   ;;  %s2677_s3 = inlined_call_operand.hbm [shape: f32[128,512], index: 3, kind: input, shape index: {}]   ;;  %s2678_s4 = inlined_call_operand.hbm [shape: f32[8,2,128], index: 4, kind: output, shape index: {0}]   ;;  %s2679_s5 = inlined_call_operand.hbm [shape: f32[2,128], index: 5, kind: output, shape index: {1}]   ;;  %s2680_s6 = inlined_call_operand.hbm [shape: f32[2,128], index: 6, kind: output, shape index: {2}]  }
   0x1   :  { %14 = vsyncpa [#allocation3 + $0x1], 0 }
   0x2   :  { %15 = vsyncpa [#allocation6], 0 }
   0x3   :  { %16 = vsyncpa [#allocation9], 0 }
   0x4   :  { %17 = vsyncpa [#allocation4], 0 }
   0x5   :  { %19 = vsyncpa [#allocation4 + $0x1], 0 }
   0x6   :  { %20 = vsyncpa [#allocation12], 0  ;;  %s2121_s21 = smov 0   ;;  %s2123_s22 = smov 0  }
   0x7   :  { %s2125_s23 = smov 0   ;;  %s2127_s24 = smov 0  }
   0x8   :  { %s2129_s25 = smov 0   ;;  %s2131_s26 = smov 0  }
   0x9 LB: > { %s1366_s27 = sadd.s32 4294967295, %s2069_s26   ;;  %s1367_s28 = sadd.s32 4294967294, %s2069_s26   ;;  %s2069_s26 = sphi %s2131_s26, %s26_s26   ;;  %s2065_s25 = sphi %s2129_s25, %s2709_s25   ;;  %s2061_s24 = sphi %s2127_s24, %s2708_s24   ;;  %s2057_s23 = sphi %s2125_s23, %s2707_s23   ;;  %s2053_s22 = sphi %s2123_s22, %s2706_s22   ;;  %s2049_s21 = sphi %s2121_s21, %s2705_s21  }
   0xa   : > { %p60_p0 = scmp.ne.s32.totalorder %s2053_s22, %s2049_s21  ;;  %p2155_p1 = scmp.eq.s32.totalorder %s1366_s27, 0 }
   0xb   : > { %p2159_p2 = scmp.eq.s32.totalorder %s1366_s27, 1  ;;  %p165_p3 = scmp.eq.s32.totalorder %s1367_s28, 1 }
   0xc   : > { %s2687_s29 = scalar_select %p2155_p1, 1, 0 }
   0xd   : > { %s2688_s30 = scalar_select %p2159_p2, 1, 0 }
   0xe   : > { %p2165_p4 = por %p2155_p1, %p60_p0  ;;  %p1368_p5 = scmp.ge.s32.totalorder %s2069_s26, 1 }
   0xf   : > { %p2170_p6 = por %p165_p3, %p60_p0  ;;  %p224_p7 = scmp.lt.s32.totalorder %s2069_s26, 3 }
  0x10   : > { %s2689_s7 = scalar_select %p2165_p4, 1, 0 }
  0x11   : > { %s2690_s8 = scalar_select %p2170_p6, 1, 0 }
  0x12   : > { %p2175_p8 = pnand %p1368_p5, %p224_p7  ;;  %s2071_s10 = smov [#allocation5]  }
  0x13   : > { %2691 = sst [smem:[#allocation19_spill]] %s2690_s8  ;;  %s239_s11 = sshll.u32 %s2071_s10, 4  ;;  %s240_s11 = int_to_ptr.vmem [resolvable:$true] %s239_s11 }
  0x14   : > { %s2692_s9 = scalar_select %p2175_p8, 1, 0 }
  0x15   : > { %p1686_p10 = pneg %p2175_p8  ;;  %s2072_s12 = smov [#allocation7]  }
  0x16   : > { %s252_s13 = sshll.u32 %s2072_s12, 4  ;;  %s2073_s15 = smov [#allocation8]   ;;  %s2188_s13 = int_to_ptr.vmem [resolvable:$true] %s252_s13 }
  0x17   : > { %p2184_p11 = pnand %p1686_p10, %p2155_p1  ;;  %s262_s16 = sshll.u32 %s2073_s15, 4  ;;  %s2190_s16 = int_to_ptr.vmem [resolvable:$true] %s262_s16 }
  0x18   : > { %s1809_s19 = scalar_lea.hbm %s2675_s1, 32 }
  0x19   : > { %p1810_p12 = scmp.ne.s32.totalorder %s2675_s1, %s1809_s19  ;;  %p2200_p13 = pneg %p2184_p11 }
  0x1a   : > { %p1816_p5 = scmp.lt.u32.totalorder %s1809_s19, %s2675_s1 }
  0x1b   : > { %p1812_p0 = pnand %p2200_p13, %p1810_p12 }
  0x1d   : > { %p1813_p3 = pneg %p1812_p0 }
  0x1f   : > { %p1818_p7 = pnand %p1816_p5, %p1813_p3 }
  0x21   : > { %1821 = shalt.err (!%p1818_p7)
}
  0x22   : > { %s1822_s15 = scalar_lea.vmem %s240_s11, 32  ;;  %p1830_p1 = scmp.lt.s32.totalorder %s240_s11, %s240_s11 }
  0x23   : > { %p1823_p10 = scmp.ne.s32.totalorder %s240_s11, %s1822_s15  ;;  %p1831_p4 = scmp.lt.s32.totalorder %s1822_s15, %s1822_s15 }
  0x25   : > { %p1825_p9 = pnand %p1823_p10, %p2200_p13  ;;  %p1832_p8 = por %p1831_p4, %p1830_p1 }
  0x27   : > { %p1826_p6 = pneg %p1825_p9 }
  0x29   : > { %p1833_p2 = pnand %p1832_p8, %p1826_p6 }
  0x2b   : > { %1836 = shalt.err (!%p1833_p2)
}
  0x2c   : > { %1689 = dma.hbm_to_vmem [thread:$0]  (!%p2184_p11), %s2675_s1, 32, %s240_s11, [#allocation6]  }
  0x2d   : > { %s1837_s27 = scalar_lea.hbm %s2676_s2, 32 }
  0x2e   : > { %p1838_p9 = scmp.ne.s32.totalorder %s2676_s2, %s1837_s27  ;;  %p1844_p2 = scmp.lt.u32.totalorder %s1837_s27, %s2676_s2 }
  0x30   : > { %p1840_p12 = pnand %p1838_p9, %p2200_p13 }
  0x32   : > { %p1841_p1 = pneg %p1840_p12 }
  0x34   : > { %p1846_p4 = pnand %p1844_p2, %p1841_p1 }
  0x36   : > { %1849 = shalt.err (!%p1846_p4)
}
  0x37   : > { %s1850_s11 = scalar_lea.vmem %s2188_s13, 32  ;;  %p1858_p3 = scmp.lt.s32.totalorder %s2188_s13, %s2188_s13 }
  0x38   : > { %p1851_p6 = scmp.ne.s32.totalorder %s2188_s13, %s1850_s11  ;;  %p1859_p5 = scmp.lt.s32.totalorder %s1850_s11, %s1850_s11 }
  0x3a   : > { %p1853_p8 = pnand %p1851_p6, %p2200_p13  ;;  %p1860_p7 = por %p1859_p5, %p1858_p3 }
  0x3c   : > { %p1854_p0 = pneg %p1853_p8 }
  0x3e   : > { %p1861_p10 = pnand %p1860_p7, %p1854_p0 }
  0x40   : > { %1864 = shalt.err (!%p1861_p10)
}
  0x41   : > { %1692 = dma.hbm_to_vmem [thread:$0]  (!%p2184_p11), %s2676_s2, 32, %s2188_s13, [#allocation6]  }
  0x42   : > { %s1865_s20 = scalar_lea.hbm %s2677_s3, 8192 }
  0x43   : > { %p1866_p9 = scmp.ne.s32.totalorder %s2677_s3, %s1865_s20  ;;  %p1872_p2 = scmp.lt.u32.totalorder %s1865_s20, %s2677_s3 }
  0x45   : > { %p1868_p12 = pnand %p1866_p9, %p2200_p13 }
  0x47   : > { %p1869_p1 = pneg %p1868_p12 }
  0x49   : > { %p1874_p4 = pnand %p1872_p2, %p1869_p1 }
  0x4b   : > { %1877 = shalt.err (!%p1874_p4)
}
  0x4c   : > { %s1878_s13 = scalar_lea.vmem %s2190_s16, 8192  ;;  %p1886_p3 = scmp.lt.s32.totalorder %s2190_s16, %s2190_s16 }
  0x4d   : > { %p1879_p6 = scmp.ne.s32.totalorder %s2190_s16, %s1878_s13  ;;  %p1887_p5 = scmp.lt.s32.totalorder %s1878_s13, %s1878_s13 }
  0x4f   : > { %p1881_p8 = pnand %p1879_p6, %p2200_p13  ;;  %p1888_p7 = por %p1887_p5, %p1886_p3 }
  0x51   : > { %p1882_p0 = pneg %p1881_p8 }
  0x53   : > { %p1889_p10 = pnand %p1888_p7, %p1882_p0 }
  0x55   : > { %1892 = shalt.err (!%p1889_p10)
}
  0x56   : > { %s2074_s11 = smov 512   ;;  %s2075_s28 = smov 32  }
  0x57   : > { %1695 = dma.hbm_to_vmem [thread:$0]  (!%p2184_p11), %s2677_s3, 8192, %s2190_s16, [#allocation9], %s2074_s11, %s2074_s11, %s2075_s28  }
  0x58   : > { %s47_s18 = sadd.s32 1, %s2057_s23  ;;  %s35_s19 = sadd.s32 1, %s2065_s25 }
  0x59   : > { %p54_p13 = scmp.ne.s32.totalorder %s2057_s23, %s2053_s22  ;;  %p36_p9 = scmp.ge.s32.totalorder %s35_s19, 2 }
  0x5a   : > { %p55_p12 = scmp.eq.s32.totalorder %s2069_s26, 0  ;;  %p2695_p1 = scmp.ne.s32.totalorder %s2688_s30, 0 }
  0x5b   : > { %p1707_p4 = scmp.lt.s32.totalorder %s2069_s26, 2  ;;  %s2711_s19 = smov (%p36_p9, %s35_s19), 0 }
  0x5c   : > { %p2269_p2 = por %p2695_p1, %p54_p13  ;;  %p56_p6 = por %p55_p12, %p54_p13 }
  0x5d   : > { %s276_s14 = sand.u32 1, %s2057_s23   ;;  %s42_s27 = ssub.s32 %s2065_s25, %s2711_s19 }
  0x5e   : > { %p45_p8 = scmp.eq.s32.totalorder %s42_s27, 0  ;;  %s1373_s16 = sshll.u32 %s276_s14, 5 }
  0x5f   : > { %s1404_s10 = sshll.u32 %s2065_s25, 9  ;;  %s280_s28 = scalar_lea.vmem [#allocation2], %s1373_s16 }
  0x60   : > { %s2281_s12 = scalar_select %p45_p8, %s2057_s23, %s47_s18  }
  0x61   : > { %s2286_s11 = scalar_lea.hbm %s2674_s0, %s1404_s10  ;;  %s290_s8 = sshll.u32 %s280_s28, 4  ;;  %s2288_s8 = int_to_ptr.vmem [resolvable:$true] %s290_s8 }
  0x62   : > { %p2292_p11 = pnand %p1707_p4, %p56_p6  ;;  %s2296_s18 = scalar_lea.sflag [#allocation3], %s276_s14 }
  0x63   : > { %s1893_s27 = scalar_lea.hbm %s2286_s11, 512  ;;  %s1898_s15 = scalar_lea.hbm %s2674_s0, 1024 }
  0x64   : > { %p1894_p0 = scmp.ne.s32.totalorder %s2286_s11, %s1893_s27  ;;  %p1895_p3 = pneg %p2292_p11 }
  0x65   : > { %p1899_p10 = scmp.lt.u32.totalorder %s2286_s11, %s2674_s0  ;;  %p1900_p13 = scmp.lt.u32.totalorder %s1898_s15, %s1893_s27 }
  0x66   : > { %p1896_p5 = pnand %p1895_p3, %p1894_p0  ;;  %p1902_p12 = scmp.lt.u32.totalorder %s1893_s27, %s2286_s11 }
  0x67   : > { %p1901_p9 = por %p1900_p13, %p1899_p10 }
  0x68   : > { %p1897_p7 = pneg %p1896_p5 }
  0x69   : > { %p1903_p1 = por %p1902_p12, %p1901_p9 }
  0x6b   : > { %p1904_p4 = pnand %p1903_p1, %p1897_p7 }
  0x6d   : > { %1907 = shalt.err (!%p1904_p4)
}
  0x6e   : > { %s1908_s14 = scalar_lea.vmem %s2288_s8, 512  ;;  %s2076_s16 = smov [#allocation2]  }
  0x6f   : > { %p1909_p6 = scmp.ne.s32.totalorder %s2288_s8, %s1908_s14  ;;  %s1913_s10 = sshll.u32 %s2076_s16, 4  ;;  %s1914_s10 = int_to_ptr.vmem [resolvable:$false] %s1913_s10 }
  0x70   : > { %s1915_s13 = scalar_lea.vmem %s1914_s10, 1024  ;;  %p1916_p5 = scmp.lt.s32.totalorder %s2288_s8, %s1914_s10 }
  0x71   : > { %p1911_p8 = pnand %p1909_p6, %p1895_p3  ;;  %p1917_p10 = scmp.lt.s32.totalorder %s1915_s13, %s1908_s14 }
  0x73   : > { %p1912_p0 = pneg %p1911_p8  ;;  %p1918_p13 = por %p1917_p10, %p1916_p5 }
  0x75   : > { %p1919_p9 = pnand %p1918_p13, %p1912_p0 }
  0x77   : > { %1922 = shalt.err (!%p1919_p9)
}
  0x78   : > { %s2077_s27 = smov 128   ;;  %s2078_s15 = smov 8  }
  0x79   : > { %1699 = dma.hbm_to_vmem [thread:$0]  (!%p2292_p11), %s2286_s11, 512, %s2288_s8, %s2296_s18, %s2077_s27, %s2077_s27, %s2078_s15  }
  0x7a   : > { %p2698_p3 = scmp.ne.s32.totalorder %s2692_s9, 0 }
  0x7b   : > { %s2327_s28 = sand.u32 (!%p2698_p3), 1, %s2053_s22   ;;  %p2699_p7 = scmp.ne.s32.totalorder (!%p2698_p3), %s2689_s7, 0 }
  0x7c   : > { %302 = sbr.rel (%p2698_p3) target bundleno = 1307 (0x51b), region = 36  ;;  %s1378_s14 = sshll.u32 (!%p2698_p3), %s2327_s28, 5 }
  0x7d   : > { %s305_s16 = scalar_lea.sflag (!%p2698_p3), [#allocation3], %s2327_s28  ;;  %s2331_s10 = scalar_lea.vmem (!%p2698_p3), [#allocation2], %s1378_s14 }
  0x83   : > { %2028 = dma.done.wait (%p2699_p7), %s305_s16, 512  }
  0x84   : > { %2030 = vsyncadd (%p2699_p7), %s305_s16, 4294966784  ;;  %p2700_p11 = scmp.ne.s32.totalorder %s2687_s29, 0 }
  0x86   : > { %2032 = dma.done.wait (%p2700_p11), [#allocation6], 64  }
  0x87   : > { %2034 = vsyncadd (%p2700_p11), [#allocation6], 4294967232 }
  0x88   : > { %2036 = dma.done.wait (%p2700_p11), [#allocation9], 8192  }
  0x89   : > { %2038 = vsyncadd (%p2700_p11), [#allocation9], 4294959104  ;;  %s1382_s9 = sshll.u32 %s2327_s28, 3  ;;  %p1383_p12 = scmp.ne.s32.totalorder %s2061_s24, 0 }
  0x8a   : > { %s2346_s11 = scalar_lea.vmem [#allocation10], %s1382_s9  ;;  %v355_v0 = vld [vmem:[#allocation5] sm:$0x3] (!%p1383_p12)  ;;  %v357_v1 = vld [vmem:[#allocation7] sm:$0x3] (!%p1383_p12) }
  0x8b   : > { %354 = sbr.rel (%p1383_p12) target bundleno = 146 (0x92), region = 56  ;;  %356 = vst [vmem:[#allocation11] sm:$0x3] (!%p1383_p12), %v355_v0  ;;  %358 = vst [vmem:[#allocation13] sm:$0x3] (!%p1383_p12), %v357_v1 }
  0x92 PF: > { %v360_v2 = vld [vmem:[#allocation8 + $0x8] sm:$0xff]  ;;  %v362_v4 = vld [vmem:[#allocation8 + $0x18] sm:$0xff]  ;;  %v359_v7 = vld [vmem:[#allocation8] sm:$0xff]  ;;  %v2079_v9 = vmov 0.0   ;;  %s2081_s29 = smov [#allocation11]   ;;  %s1405_s8 = sshll.u32 %s2061_s24, 7 }
  0x93   : > { %v364_v3 = vld [vmem:[#allocation8 + $0x28] sm:$0xff]  ;;  %v366_v6 = vld [vmem:[#allocation8 + $0x38] sm:$0xff]  ;;  %v363_v8 = vld [vmem:[#allocation8 + $0x20] sm:$0xff]  ;;  %490 = vmatprep.mubr.f32.mxu0 %v2079_v9  ;;  %561 = vmatprep.mubr.f32.mxu1 %v2079_v9  ;;  %s1212_s7 = sshll.u32 %s2081_s29, 4  ;;  %s1196_s17 = sshll.u32 %s2346_s11, 4  ;;  %s1213_s7 = int_to_ptr.vmem [resolvable:$true] %s1212_s7  ;;  %s2577_s17 = int_to_ptr.vmem [resolvable:$true] %s1196_s17 }
  0x94   : > { %v2349_v5 = vpack.c.bf16 %v364_v3, %v360_v2  ;;  %v2353_v10 = vpack.c.bf16 %v366_v6, %v362_v4  ;;  %v2355_v11 = vpack.c.bf16 %v363_v8, %v359_v7  ;;  %v361_v12 = vld [vmem:[#allocation8 + $0x10] sm:$0xff]  ;;  %v368_v14 = vld [vmem:[#allocation8 + $0x48] sm:$0xff]  ;;  %v370_v17 = vld [vmem:[#allocation8 + $0x58] sm:$0xff]  ;;  %s2082_s18 = smov [#allocation13]   ;;  %s2575_s14 = scalar_lea.hbm %s2678_s4, %s1405_s8 }
  0x95   : > { %v365_v13 = vld [vmem:[#allocation8 + $0x30] sm:$0xff]  ;;  %v372_v16 = vld [vmem:[#allocation8 + $0x68] sm:$0xff]  ;;  %v374_v18 = vld [vmem:[#allocation8 + $0x78] sm:$0xff]  ;;  %s1225_s13 = sshll.u32 %s2082_s18, 4  ;;  %s1923_s16 = scalar_lea.vmem %s1213_s7, 32  ;;  %s2580_s13 = int_to_ptr.vmem [resolvable:$true] %s1225_s13 }
  0x96   : > { %1407 = vmatprep.subr.bf16.mxu0 %v2349_v5  ;;  %v2358_v15 = vpack.c.bf16 %v365_v13, %v361_v12  ;;  %1439 = vmatprep.subr.bf16.mxu1 %v2353_v10  ;;  %v2362_v19 = vpack.c.bf16 %v372_v16, %v368_v14  ;;  %v2364_v20 = vpack.c.bf16 %v374_v18, %v370_v17  ;;  %v367_v21 = vld [vmem:[#allocation8 + $0x40] sm:$0xff]  ;;  %v369_v23 = vld [vmem:[#allocation8 + $0x50] sm:$0xff]  ;;  %v376_v26 = vld [vmem:[#allocation8 + $0x88] sm:$0xff]  ;;  %p1924_p1 = scmp.ne.s32.totalorder %s1213_s7, %s1923_s16  ;;  %p2701_p4 = scmp.ne.s32.totalorder %s2688_s30, 0 }
  0x97   : > { %1409 = vmatpush1.bf16.msra.mxu0 %v2355_v11  ;;  %v371_v22 = vld [vmem:[#allocation8 + $0x60] sm:$0xff]  ;;  %v373_v25 = vld [vmem:[#allocation8 + $0x70] sm:$0xff]  ;;  %v380_v27 = vld [vmem:[#allocation8 + $0xa8] sm:$0xff]  ;;  %p1930_p0 = scmp.lt.s32.totalorder %s1213_s7, %s1213_s7  ;;  %p1931_p5 = scmp.lt.s32.totalorder %s1923_s16, %s1923_s16 }
  0x98   : > { %1441 = vmatpush1.bf16.msra.mxu1 %v2358_v15  ;;  %v2367_v24 = vpack.c.bf16 %v371_v22, %v367_v21  ;;  %1411 = vmatprep.subr.bf16.mxu0 %v2362_v19  ;;  %v2371_v28 = vpack.c.bf16 %v373_v25, %v369_v23  ;;  %v2373_v29 = vpack.c.bf16 %v380_v27, %v376_v26  ;;  %v378_v30 = vld [vmem:[#allocation8 + $0x98] sm:$0xff]  ;;  %v375_v32 = vld [vmem:[#allocation8 + $0x80] sm:$0xff]  ;;  %v377_v35 = vld [vmem:[#allocation8 + $0x90] sm:$0xff]  ;;  %p1925_p6 = pnand %p1924_p1, %p2701_p4 }
  0x99   : > { %1443 = vmatprep.subr.bf16.mxu1 %v2364_v20  ;;  %v382_v31 = vld [vmem:[#allocation8 + $0xb8] sm:$0xff]  ;;  %v379_v34 = vld [vmem:[#allocation8 + $0xa0] sm:$0xff]  ;;  %v381_v36 = vld [vmem:[#allocation8 + $0xb0] sm:$0xff]  ;;  %p1932_p10 = por %p1931_p5, %p1930_p0 }
  0x9a   : > { %v2375_v33 = vpack.c.bf16 %v382_v31, %v378_v30  ;;  %v2378_v37 = vpack.c.bf16 %v379_v34, %v375_v32  ;;  %v384_v38 = vld [vmem:[#allocation8 + $0xc8] sm:$0xff]  ;;  %v386_v40 = vld [vmem:[#allocation8 + $0xd8] sm:$0xff]  ;;  %v2382_v41 = vpack.c.bf16 %v381_v36, %v377_v35  ;;  %v383_v44 = vld [vmem:[#allocation8 + $0xc0] sm:$0xff]  ;;  %p1926_p8 = pneg %p1925_p6 }
  0x9b   : > { %1413 = vmatpush1.bf16.msra.mxu0 %v2367_v24  ;;  %v388_v39 = vld [vmem:[#allocation8 + $0xe8] sm:$0xff]  ;;  %v390_v43 = vld [vmem:[#allocation8 + $0xf8] sm:$0xff]  ;;  %v387_v45 = vld [vmem:[#allocation8 + $0xe0] sm:$0xff] }
  0x9c   : > { %1445 = vmatpush1.bf16.msra.mxu1 %v2371_v28  ;;  %1415 = vmatprep.subr.bf16.mxu0 %v2373_v29  ;;  %v2384_v42 = vpack.c.bf16 %v388_v39, %v384_v38  ;;  %v2387_v46 = vpack.c.bf16 %v390_v43, %v386_v40  ;;  %v385_v47 = vld [vmem:[#allocation8 + $0xd0] sm:$0xff]  ;;  %v392_v49 = vld [vmem:[#allocation8 + $0x108] sm:$0xff]  ;;  %v394_v51 = vld [vmem:[#allocation8 + $0x118] sm:$0xff]  ;;  %v2390_v53 = vpack.c.bf16 %v387_v45, %v383_v44  ;;  %p1933_p13 = pnand %p1932_p10, %p1926_p8 }
  0x9d   : > { %1447 = vmatprep.subr.bf16.mxu1 %v2375_v33  ;;  %v389_v48 = vld [vmem:[#allocation8 + $0xf0] sm:$0xff]  ;;  %v396_v50 = vld [vmem:[#allocation8 + $0x128] sm:$0xff]  ;;  %v398_v52 = vld [vmem:[#allocation8 + $0x138] sm:$0xff] }
  0x9e   : > { %v2394_v54 = vpack.c.bf16 %v389_v48, %v385_v47  ;;  %v2396_v55 = vpack.c.bf16 %v396_v50, %v392_v49  ;;  %v391_v56 = vld [vmem:[#allocation8 + $0x100] sm:$0xff]  ;;  %v393_v58 = vld [vmem:[#allocation8 + $0x110] sm:$0xff]  ;;  %v2399_v59 = vpack.c.bf16 %v398_v52, %v394_v51  ;;  %v400_v61 = vld [vmem:[#allocation8 + $0x148] sm:$0xff]  ;;  %v2080_v51 = vmov 1983009808  }
  0x9f   : > { %1417 = vmatpush1.bf16.msra.mxu0 %v2378_v37  ;;  %v395_v57 = vld [vmem:[#allocation8 + $0x120] sm:$0xff]  ;;  %v397_v60 = vld [vmem:[#allocation8 + $0x130] sm:$0xff]  ;;  %v404_v62 = vld [vmem:[#allocation8 + $0x168] sm:$0xff]  ;;  %v575_v52 = vunpack.c.l.s4 %v2080_v51 }
  0xa0   : > { %1449 = vmatpush1.bf16.msra.mxu1 %v2382_v41  ;;  %1419 = vmatprep.subr.bf16.mxu0 %v2384_v42  ;;  %v402_v63 = vld [vmem:[#allocation8 + $0x158] sm:$0xff]  ;;  %v2402_v1 = vpack.c.bf16 %v395_v57, %v391_v56  ;;  %v2406_v2 = vpack.c.bf16 %v397_v60, %v393_v58  ;;  %v2408_v3 = vpack.c.bf16 %v404_v62, %v400_v61  ;;  %v399_v4 = vld [vmem:[#allocation8 + $0x140] sm:$0xff]  ;;  %v401_v7 = vld [vmem:[#allocation8 + $0x150] sm:$0xff]  ;;  %v577_v56 = vlaneseq }
  0xa1   : > { %1451 = vmatprep.subr.bf16.mxu1 %v2387_v46  ;;  %v406_v0 = vld [vmem:[#allocation8 + $0x178] sm:$0xff]  ;;  %v403_v6 = vld [vmem:[#allocation8 + $0x160] sm:$0xff]  ;;  %v405_v12 = vld [vmem:[#allocation8 + $0x170] sm:$0xff]  ;;  %v576_v57 = vunpack.c.0.s8 %v575_v52 }
  0xa2   : > { %v2411_v8 = vpack.c.bf16 %v406_v0, %v402_v63  ;;  %v408_v13 = vld [vmem:[#allocation8 + $0x188] sm:$0xff]  ;;  %v410_v16 = vld [vmem:[#allocation8 + $0x198] sm:$0xff]  ;;  %v2414_v18 = vpack.c.bf16 %v403_v6, %v399_v4  ;;  %v2418_v21 = vpack.c.bf16 %v405_v12, %v401_v7  ;;  %v407_v23 = vld [vmem:[#allocation8 + $0x180] sm:$0xff]  ;;  %v578_v58 = vshrl.u32 %v577_v56, 7 }
  0xa3   : > { %1421 = vmatpush1.bf16.msra.mxu0 %v2390_v53  ;;  %v412_v14 = vld [vmem:[#allocation8 + $0x1a8] sm:$0xff]  ;;  %v414_v17 = vld [vmem:[#allocation8 + $0x1b8] sm:$0xff]  ;;  %v411_v25 = vld [vmem:[#allocation8 + $0x1a0] sm:$0xff] }
  0xa4   : > { %1453 = vmatpush1.bf16.msra.mxu1 %v2394_v54  ;;  %1423 = vmatprep.subr.bf16.mxu0 %v2396_v55  ;;  %v2420_v22 = vpack.c.bf16 %v412_v14, %v408_v13  ;;  %v409_v26 = vld [vmem:[#allocation8 + $0x190] sm:$0xff]  ;;  %v2423_v27 = vpack.c.bf16 %v414_v17, %v410_v16  ;;  %v416_v31 = vld [vmem:[#allocation8 + $0x1c8] sm:$0xff]  ;;  %v418_v34 = vld [vmem:[#allocation8 + $0x1d8] sm:$0xff]  ;;  %v2426_v36 = vpack.c.bf16 %v411_v25, %v407_v23 }
  0xa5   : > { %1455 = vmatprep.subr.bf16.mxu1 %v2399_v59  ;;  %v413_v30 = vld [vmem:[#allocation8 + $0x1b0] sm:$0xff]  ;;  %v420_v32 = vld [vmem:[#allocation8 + $0x1e8] sm:$0xff]  ;;  %v422_v35 = vld [vmem:[#allocation8 + $0x1f8] sm:$0xff]  ;;  %v2483_v61 = vsub.s32 %v576_v57, %v578_v58 }
  0xa6   : > { %v2430_v38 = vpack.c.bf16 %v413_v30, %v409_v26  ;;  %v2432_v39 = vpack.c.bf16 %v420_v32, %v416_v31  ;;  %v415_v40 = vld [vmem:[#allocation8 + $0x1c0] sm:$0xff]  ;;  %v2435_v44 = vpack.c.bf16 %v422_v35, %v418_v34  ;;  %v417_v45 = vld [vmem:[#allocation8 + $0x1d0] sm:$0xff] }
  0xa7   : > { %1425 = vmatpush1.bf16.msra.mxu0 %v2402_v1  ;;  %v419_v43 = vld [vmem:[#allocation8 + $0x1e0] sm:$0xff]  ;;  %v421_v47 = vld [vmem:[#allocation8 + $0x1f0] sm:$0xff] }
  0xa8   : > { %1457 = vmatpush1.bf16.msra.mxu1 %v2406_v2  ;;  %1427 = vmatprep.subr.bf16.mxu0 %v2408_v3  ;;  %v2438_v48 = vpack.c.bf16 %v419_v43, %v415_v40  ;;  %v2442_v49 = vpack.c.bf16 %v421_v47, %v417_v45  ;;  %v423_v50 = vld [vmem:[#allocation11] sm:$0x3]  ;;  %v425_v13 = vld [vmem:[%s2331_s10] sm:$0xff]  ;;  %v424_v31 = vld [vmem:[#allocation13] sm:$0x3] }
  0xa9   : > { %1459 = vmatprep.subr.bf16.mxu1 %v2411_v8 }
  0xab   : > { %1429 = vmatpush1.bf16.msra.mxu0 %v2414_v18 }
  0xac   : > { %1461 = vmatpush1.bf16.msra.mxu1 %v2418_v21  ;;  %1431 = vmatprep.subr.bf16.mxu0 %v2420_v22 }
  0xad   : > { %1463 = vmatprep.subr.bf16.mxu1 %v2423_v27 }
  0xaf   : > { %1433 = vmatpush1.bf16.msra.mxu0 %v2426_v36 }
  0xb0   : > { %1465 = vmatpush1.bf16.msra.mxu1 %v2430_v38  ;;  %1435 = vmatprep.subr.bf16.mxu0 %v2432_v39 }
  0xb1   : > { %1467 = vmatprep.subr.bf16.mxu1 %v2435_v44 }
  0xb3   : > { %1437 = vmatpush1.bf16.msra.mxu0 %v2438_v48 }
  0xb4   : > { %1469 = vmatpush1.bf16.msra.mxu1 %v2442_v49  ;;  %1471 = vmatprep.subr.bf16.mxu0 %v2349_v5 }
  0xb5   : > { %1503 = vmatprep.subr.bf16.mxu1 %v2353_v10 }
  0xb6   : > { %491 = vmatmul.mubr.f32.vlgmr.msra.gmra.mrb[0].mxu0 %v423_v50 }
  0xb7   : > { %562 = vmatmul.mubr.f32.vlgmr.msra.gmra.mrb[0].mxu1 %v423_v50  ;;  %1473 = vmatpush1.bf16.msra.mxu0 %v2355_v11 }
  0xb8   : > { %1505 = vmatpush1.bf16.msra.mxu1 %v2358_v15  ;;  %1475 = vmatprep.subr.bf16.mxu0 %v2362_v19 }
  0xb9   : > { %1507 = vmatprep.subr.bf16.mxu1 %v2364_v20  ;;  %678 = vmatprep.mubr.f32.mxu0 %v2079_v9 }
  0xba   : > { %749 = vmatprep.mubr.f32.mxu1 %v2079_v9 }
  0xbb   : > { %1477 = vmatpush1.bf16.msra.mxu0 %v2367_v24 }
  0xbc   : > { %1509 = vmatpush1.bf16.msra.mxu1 %v2371_v28  ;;  %1479 = vmatprep.subr.bf16.mxu0 %v2373_v29 }
  0xbd   : > { %1511 = vmatprep.subr.bf16.mxu1 %v2375_v33 }
  0xbf   : > { %1481 = vmatpush1.bf16.msra.mxu0 %v2378_v37 }
  0xc0   : > { %1513 = vmatpush1.bf16.msra.mxu1 %v2382_v41  ;;  %1483 = vmatprep.subr.bf16.mxu0 %v2384_v42 }
  0xc1   : > { %1515 = vmatprep.subr.bf16.mxu1 %v2387_v46 }
  0xc3   : > { %1485 = vmatpush1.bf16.msra.mxu0 %v2390_v53 }
  0xc4   : > { %1517 = vmatpush1.bf16.msra.mxu1 %v2394_v54  ;;  %1487 = vmatprep.subr.bf16.mxu0 %v2396_v55 }
  0xc5   : > { %1519 = vmatprep.subr.bf16.mxu1 %v2399_v59 }
  0xc7   : > { %1489 = vmatpush1.bf16.msra.mxu0 %v2402_v1 }
  0xc8   : > { %1521 = vmatpush1.bf16.msra.mxu1 %v2406_v2  ;;  %1491 = vmatprep.subr.bf16.mxu0 %v2408_v3 }
  0xc9   : > { %1523 = vmatprep.subr.bf16.mxu1 %v2411_v8 }
  0xcb   : > { %1493 = vmatpush1.bf16.msra.mxu0 %v2414_v18 }
  0xcc   : > { %1525 = vmatpush1.bf16.msra.mxu1 %v2418_v21  ;;  %1495 = vmatprep.subr.bf16.mxu0 %v2420_v22 }
  0xcd   : > { %1527 = vmatprep.subr.bf16.mxu1 %v2423_v27 }
  0xcf   : > { %1497 = vmatpush1.bf16.msra.mxu0 %v2426_v36 }
  0xd0   : > { %1529 = vmatpush1.bf16.msra.mxu1 %v2430_v38  ;;  %1499 = vmatprep.subr.bf16.mxu0 %v2432_v39 }
  0xd1   : > { %1531 = vmatprep.subr.bf16.mxu1 %v2435_v44 }
  0xd3   : > { %1501 = vmatpush1.bf16.msra.mxu0 %v2438_v48 }
  0xd4   : > { %1533 = vmatpush1.bf16.msra.mxu1 %v2442_v49  ;;  %1535 = vmatprep.subr.bf16.mxu0 %v2349_v5 }
  0xd5   : > { %1567 = vmatprep.subr.bf16.mxu1 %v2353_v10 }
 0x189   : > { %v492_v60 = vpop.f32.mrb[0].mxu0 }
 0x18a   : > { %v563_v62 = vpop.f32.mrb[0].mxu1  ;;  %v494_v63 = vpop.f32.mrb[1].mxu0 }
 0x18b   : > { %v572_v0 = vcombine.low %v492_v60, %v494_v63  ;;  %v565_v4 = vpop.f32.mrb[1].mxu1 }
 0x18c   : > { %v573_v6 = vcombine.low %v563_v62, %v565_v4 }
 0x18d   : > { %v580_v7 = vrot.slane %v572_v0, %v2483_v61  ;;  %v1385_v0 = vld [vmem:[%s2331_s10 + $0x8] sm:$0xff] }
 0x18e   : > { %v587_v12 = vrot.slane %v573_v6, %v2483_v61 }
 0x190   : > { %v588_v14 = vcombine.low %v580_v7, %v587_v12 }
 0x192   : > { %v590_v16 = vadd.f32 %v588_v14, %v425_v13 }
 0x194   : > { %v1384_v17 = vmul.f32 -1.442695, %v590_v16  ;;  %v598_v26 = vrot.slane %v590_v16, 6 }
 0x196   : > { %1777 = vpow2.f32 %v1384_v17 }
 0x1a0   : > { %v1778_v23 = vpop.eup %1777 }
 0x1a1   : > { %v594_v25 = vadd.f32 1.0, %v1778_v23 }
 0x1a3   : > { %1779 = vrcp.f32 %v594_v25 }
 0x1a4   : > { %1781 = vtanh.f32 %v598_v26 }
 0x1ad   : > { %v1780_v30 = vpop.eup %1779 }
 0x1ae   : > { %v602_v32 = vrot.slane %v1780_v30, 2  ;;  %v1782_v34 = vpop.eup %1781  ;;  %v608_v45 = vrot.slane %v1780_v30, 4 }
 0x1af   : > { %v605_v35 = vmul.f32 %v1782_v34, %v1780_v30  ;;  %v1391_v34 = vld [vmem:[%s2331_s10 + $0x18] sm:$0xff] }
 0x1b0   : > { %v604_v40 = vmul.f32 %v602_v32, %v424_v31 }
 0x1b2   : > { %v2488_v43 = vadd.f32 %v605_v35, %v604_v40 }
 0x1b4   : > { %1783 = vtanh.f32 %v2488_v43 }
 0x1be   : > { %v1784_v47 = vpop.eup %1783 }
 0x1bf   : > { %v610_v50 = vmul.f32 %v1784_v47, %v608_v45 }
 0x1c1   : > { %611 = vst [vmem:[%s2346_s11] sm:$0x3] %v610_v50  ;;  %679 = vmatmul.mubr.f32.vlgmr.msra.gmra.mrb[2].mxu0 %v610_v50  ;;  %750 = vmatmul.mubr.f32.vlgmr.msra.gmra.mrb[2].mxu1 %v610_v50 }
 0x1c2   : > { %1537 = vmatpush1.bf16.msra.mxu0 %v2355_v11  ;;  %1569 = vmatpush1.bf16.msra.mxu1 %v2358_v15 }
 0x1c3   : > { %1539 = vmatprep.subr.bf16.mxu0 %v2362_v19  ;;  %1571 = vmatprep.subr.bf16.mxu1 %v2364_v20 }
 0x1c4   : > { %867 = vmatprep.mubr.f32.mxu0 %v2079_v9  ;;  %938 = vmatprep.mubr.f32.mxu1 %v2079_v9 }
 0x1c6   : > { %1541 = vmatpush1.bf16.msra.mxu0 %v2367_v24  ;;  %1573 = vmatpush1.bf16.msra.mxu1 %v2371_v28 }
 0x1c7   : > { %1543 = vmatprep.subr.bf16.mxu0 %v2373_v29  ;;  %1575 = vmatprep.subr.bf16.mxu1 %v2375_v33 }
 0x1ca   : > { %1545 = vmatpush1.bf16.msra.mxu0 %v2378_v37  ;;  %1577 = vmatpush1.bf16.msra.mxu1 %v2382_v41 }
 0x1cb   : > { %1547 = vmatprep.subr.bf16.mxu0 %v2384_v42  ;;  %1579 = vmatprep.subr.bf16.mxu1 %v2387_v46 }
 0x1ce   : > { %1549 = vmatpush1.bf16.msra.mxu0 %v2390_v53  ;;  %1581 = vmatpush1.bf16.msra.mxu1 %v2394_v54 }
 0x1cf   : > { %1551 = vmatprep.subr.bf16.mxu0 %v2396_v55  ;;  %1583 = vmatprep.subr.bf16.mxu1 %v2399_v59 }
 0x1d2   : > { %1553 = vmatpush1.bf16.msra.mxu0 %v2402_v1  ;;  %1585 = vmatpush1.bf16.msra.mxu1 %v2406_v2 }
 0x1d3   : > { %1555 = vmatprep.subr.bf16.mxu0 %v2408_v3  ;;  %1587 = vmatprep.subr.bf16.mxu1 %v2411_v8 }
 0x1d6   : > { %1557 = vmatpush1.bf16.msra.mxu0 %v2414_v18  ;;  %1589 = vmatpush1.bf16.msra.mxu1 %v2418_v21 }
 0x1d7   : > { %1559 = vmatprep.subr.bf16.mxu0 %v2420_v22  ;;  %1591 = vmatprep.subr.bf16.mxu1 %v2423_v27 }
 0x1da   : > { %1561 = vmatpush1.bf16.msra.mxu0 %v2426_v36  ;;  %1593 = vmatpush1.bf16.msra.mxu1 %v2430_v38 }
 0x1db   : > { %1563 = vmatprep.subr.bf16.mxu0 %v2432_v39  ;;  %1595 = vmatprep.subr.bf16.mxu1 %v2435_v44 }
 0x1de   : > { %1565 = vmatpush1.bf16.msra.mxu0 %v2438_v48  ;;  %1597 = vmatpush1.bf16.msra.mxu1 %v2442_v49 }
 0x1df   : > { %1599 = vmatprep.subr.bf16.mxu0 %v2349_v5  ;;  %1631 = vmatprep.subr.bf16.mxu1 %v2353_v10 }
 0x294   : > { %v680_v51 = vpop.f32.mrb[2].mxu0  ;;  %v751_v52 = vpop.f32.mrb[2].mxu1 }
 0x295   : > { %v682_v56 = vpop.f32.mrb[3].mxu0  ;;  %v753_v57 = vpop.f32.mrb[3].mxu1 }
 0x296   : > { %v760_v58 = vcombine.low %v680_v51, %v682_v56  ;;  %v761_v60 = vcombine.low %v751_v52, %v753_v57 }
 0x298   : > { %v768_v62 = vrot.slane %v760_v58, %v2483_v61  ;;  %v775_v63 = vrot.slane %v761_v60, %v2483_v61 }
 0x29a   : > { %v776_v4 = vcombine.low %v768_v62, %v775_v63 }
 0x29c   : > { %v778_v6 = vadd.f32 %v1385_v0, %v776_v4 }
 0x29e   : > { %v1386_v7 = vmul.f32 -1.442695, %v778_v6  ;;  %v786_v13 = vrot.slane %v778_v6, 6 }
 0x2a0   : > { %1785 = vpow2.f32 %v1386_v7 }
 0x2aa   : > { %v1786_v12 = vpop.eup %1785 }
 0x2ab   : > { %v782_v5 = vadd.f32 1.0, %v1786_v12 }
 0x2ad   : > { %1787 = vrcp.f32 %v782_v5 }
 0x2ae   : > { %1789 = vtanh.f32 %v786_v13 }
 0x2b7   : > { %v1788_v10 = vpop.eup %1787 }
 0x2b8   : > { %v790_v14 = vrot.slane %v1788_v10, 2  ;;  %v1790_v16 = vpop.eup %1789  ;;  %v796_v26 = vrot.slane %v1788_v10, 4 }
 0x2b9   : > { %v793_v17 = vmul.f32 %v1790_v16, %v1788_v10 }
 0x2ba   : > { %v792_v23 = vmul.f32 %v790_v14, %v2488_v43 }
 0x2bc   : > { %v794_v25 = vadd.f32 %v793_v17, %v792_v23 }
 0x2be   : > { %1791 = vtanh.f32 %v794_v25 }
 0x2c8   : > { %v1792_v30 = vpop.eup %1791 }
 0x2c9   : > { %v798_v31 = vmul.f32 %v1792_v30, %v796_v26 }
 0x2cb   : > { %1387 = vst [vmem:[%s2346_s11 + $0x2] sm:$0x3] %v798_v31  ;;  %868 = vmatmul.mubr.f32.vlgmr.msra.gmra.mrb[4].mxu0 %v798_v31  ;;  %939 = vmatmul.mubr.f32.vlgmr.msra.gmra.mrb[4].mxu1 %v798_v31 }
 0x2cc   : > { %1601 = vmatpush1.bf16.msra.mxu0 %v2355_v11  ;;  %1633 = vmatpush1.bf16.msra.mxu1 %v2358_v15 }
 0x2cd   : > { %1603 = vmatprep.subr.bf16.mxu0 %v2362_v19  ;;  %1635 = vmatprep.subr.bf16.mxu1 %v2364_v20 }
 0x2ce   : > { %1056 = vmatprep.mubr.f32.mxu0 %v2079_v9  ;;  %1127 = vmatprep.mubr.f32.mxu1 %v2079_v9 }
 0x2d0   : > { %1605 = vmatpush1.bf16.msra.mxu0 %v2367_v24  ;;  %1637 = vmatpush1.bf16.msra.mxu1 %v2371_v28 }
 0x2d1   : > { %1607 = vmatprep.subr.bf16.mxu0 %v2373_v29  ;;  %1639 = vmatprep.subr.bf16.mxu1 %v2375_v33  ;;  %v1388_v33 = vld [vmem:[%s2331_s10 + $0x10] sm:$0xff] }
 0x2d4   : > { %1609 = vmatpush1.bf16.msra.mxu0 %v2378_v37  ;;  %1641 = vmatpush1.bf16.msra.mxu1 %v2382_v41 }
 0x2d5   : > { %1611 = vmatprep.subr.bf16.mxu0 %v2384_v42  ;;  %1643 = vmatprep.subr.bf16.mxu1 %v2387_v46 }
 0x2d8   : > { %1613 = vmatpush1.bf16.msra.mxu0 %v2390_v53  ;;  %1645 = vmatpush1.bf16.msra.mxu1 %v2394_v54 }
 0x2d9   : > { %1615 = vmatprep.subr.bf16.mxu0 %v2396_v55  ;;  %1647 = vmatprep.subr.bf16.mxu1 %v2399_v59 }
 0x2dc   : > { %1617 = vmatpush1.bf16.msra.mxu0 %v2402_v1  ;;  %1649 = vmatpush1.bf16.msra.mxu1 %v2406_v2 }
 0x2dd   : > { %1619 = vmatprep.subr.bf16.mxu0 %v2408_v3  ;;  %1651 = vmatprep.subr.bf16.mxu1 %v2411_v8 }
 0x2e0   : > { %1621 = vmatpush1.bf16.msra.mxu0 %v2414_v18  ;;  %1653 = vmatpush1.bf16.msra.mxu1 %v2418_v21 }
 0x2e1   : > { %1623 = vmatprep.subr.bf16.mxu0 %v2420_v22  ;;  %1655 = vmatprep.subr.bf16.mxu1 %v2423_v27 }
 0x2e4   : > { %1625 = vmatpush1.bf16.msra.mxu0 %v2426_v36  ;;  %1657 = vmatpush1.bf16.msra.mxu1 %v2430_v38 }
 0x2e5   : > { %1627 = vmatprep.subr.bf16.mxu0 %v2432_v39  ;;  %1659 = vmatprep.subr.bf16.mxu1 %v2435_v44 }
 0x2e8   : > { %1629 = vmatpush1.bf16.msra.mxu0 %v2438_v48  ;;  %1661 = vmatpush1.bf16.msra.mxu1 %v2442_v49 }
 0x39e   : > { %v869_v9 = vpop.f32.mrb[4].mxu0  ;;  %v940_v11 = vpop.f32.mrb[4].mxu1 }
 0x39f   : > { %v871_v15 = vpop.f32.mrb[5].mxu0  ;;  %v942_v19 = vpop.f32.mrb[5].mxu1 }
 0x3a0   : > { %v949_v20 = vcombine.low %v869_v9, %v871_v15  ;;  %v950_v24 = vcombine.low %v940_v11, %v942_v19 }
 0x3a2   : > { %v957_v28 = vrot.slane %v949_v20, %v2483_v61  ;;  %v964_v29 = vrot.slane %v950_v24, %v2483_v61 }
 0x3a4   : > { %v965_v37 = vcombine.low %v957_v28, %v964_v29 }
 0x3a6   : > { %v967_v41 = vadd.f32 %v1388_v33, %v965_v37 }
 0x3a8   : > { %v1389_v42 = vmul.f32 -1.442695, %v967_v41  ;;  %v975_v54 = vrot.slane %v967_v41, 6 }
 0x3aa   : > { %1793 = vpow2.f32 %v1389_v42 }
 0x3b4   : > { %v1794_v46 = vpop.eup %1793 }
 0x3b5   : > { %v971_v53 = vadd.f32 1.0, %v1794_v46 }
 0x3b7   : > { %1795 = vrcp.f32 %v971_v53 }
 0x3b8   : > { %1797 = vtanh.f32 %v975_v54 }
 0x3c1   : > { %v1796_v55 = vpop.eup %1795 }
 0x3c2   : > { %v979_v59 = vrot.slane %v1796_v55, 2  ;;  %v1798_v1 = vpop.eup %1797  ;;  %v985_v18 = vrot.slane %v1796_v55, 4 }
 0x3c3   : > { %v982_v2 = vmul.f32 %v1798_v1, %v1796_v55 }
 0x3c4   : > { %v981_v3 = vmul.f32 %v979_v59, %v794_v25 }
 0x3c6   : > { %v983_v8 = vadd.f32 %v982_v2, %v981_v3 }
 0x3c8   : > { %1799 = vtanh.f32 %v983_v8 }
 0x3d2   : > { %v1800_v21 = vpop.eup %1799 }
 0x3d3   : > { %v987_v22 = vmul.f32 %v1800_v21, %v985_v18 }
 0x3d5   : > { %1390 = vst [vmem:[%s2346_s11 + $0x4] sm:$0x3] %v987_v22  ;;  %1057 = vmatmul.mubr.f32.vlgmr.msra.gmra.mrb[6].mxu0 %v987_v22  ;;  %1128 = vmatmul.mubr.f32.vlgmr.msra.gmra.mrb[6].mxu1 %v987_v22 }
 0x4a8   : > { %v1058_v27 = vpop.f32.mrb[6].mxu0  ;;  %v1129_v36 = vpop.f32.mrb[6].mxu1 }
 0x4a9   : > { %v1060_v38 = vpop.f32.mrb[7].mxu0  ;;  %v1131_v39 = vpop.f32.mrb[7].mxu1 }
 0x4aa   : > { %v1138_v44 = vcombine.low %v1058_v27, %v1060_v38  ;;  %v1139_v48 = vcombine.low %v1129_v36, %v1131_v39 }
 0x4ac   : > { %v1146_v49 = vrot.slane %v1138_v44, %v2483_v61  ;;  %v1153_v32 = vrot.slane %v1139_v48, %v2483_v61 }
 0x4ae   : > { %v1154_v35 = vcombine.low %v1146_v49, %v1153_v32 }
 0x4b0   : > { %v1156_v40 = vadd.f32 %v1391_v34, %v1154_v35 }
 0x4b2   : > { %v1392_v43 = vmul.f32 -1.442695, %v1156_v40  ;;  %v1164_v50 = vrot.slane %v1156_v40, 6 }
 0x4b4   : > { %1801 = vpow2.f32 %v1392_v43 }
 0x4be   : > { %v1802_v45 = vpop.eup %1801 }
 0x4bf   : > { %v1160_v47 = vadd.f32 1.0, %v1802_v45 }
 0x4c1   : > { %1803 = vrcp.f32 %v1160_v47 }
 0x4c2   : > { %1805 = vtanh.f32 %v1164_v50 }
 0x4cb   : > { %v1804_v51 = vpop.eup %1803 }
 0x4cc   : > { %v1168_v52 = vrot.slane %v1804_v51, 2  ;;  %v1806_v56 = vpop.eup %1805  ;;  %v1174_v61 = vrot.slane %v1804_v51, 4 }
 0x4cd   : > { %v1171_v58 = vmul.f32 %v1806_v56, %v1804_v51 }
 0x4ce   : > { %v1170_v57 = vmul.f32 %v1168_v52, %v983_v8 }
 0x4d0   : > { %v1172_v60 = vadd.f32 %v1171_v58, %v1170_v57 }
 0x4d2   : > { %1807 = vtanh.f32 %v1172_v60  ;;  %1180 = vst [vmem:[#allocation13] sm:$0x3] %v1172_v60 }
 0x4dc   : > { %v1808_v62 = vpop.eup %1807 }
 0x4dd   : > { %v1176_v63 = vmul.f32 %v1808_v62, %v1174_v61 }
 0x4df   : > { %1393 = vst [vmem:[%s2346_s11 + $0x6] sm:$0x3] %v1176_v63  ;;  %1179 = vst [vmem:[#allocation11] sm:$0x3] %v1176_v63 }
 0x4e0   : > { %1936 = shalt.err (!%p1933_p13)
}
 0x4e1   : > { %s1937_s9 = scalar_lea.hbm %s2679_s5, 32 }
 0x4e2   : > { %p1938_p9 = scmp.ne.s32.totalorder %s2679_s5, %s1937_s9  ;;  %p1943_p11 = scmp.lt.u32.totalorder %s1937_s9, %s2679_s5 }
 0x4e4   : > { %p1939_p3 = pnand %p1938_p9, %p2701_p4 }
 0x4e6   : > { %p1940_p7 = pneg %p1939_p3 }
 0x4e8   : > { %p1945_p12 = pnand %p1943_p11, %p1940_p7 }
 0x4ea   : > { %1948 = shalt.err (!%p1945_p12)
}
 0x4eb   : > { %1678 = dma.vmem_to_hbm [thread:$0]  (%p2701_p4), %s1213_s7, 32, %s2679_s5, [#allocation12]  }
 0x4ec   : > { %s1182_s16 = scalar_lea.sflag [#allocation4], %s2327_s28  ;;  %s1949_s24 = scalar_lea.vmem %s2577_s17, 128 }
 0x4ed   : > { %p1950_p1 = scmp.ne.s32.totalorder %s2577_s17, %s1949_s24  ;;  %s2083_s10 = smov [#allocation10]  }
 0x4ee   : > { %s1953_s9 = sshll.u32 %s2083_s10, 4  ;;  %s1954_s9 = int_to_ptr.vmem [resolvable:$false] %s1953_s9 }
 0x4ef   : > { %p1951_p6 = pnand %p1950_p1, %p2269_p2  ;;  %s1955_s29 = scalar_lea.vmem %s1954_s9, 256 }
 0x4f0   : > { %p1956_p0 = scmp.lt.s32.totalorder %s2577_s17, %s1954_s9  ;;  %p1957_p5 = scmp.lt.s32.totalorder %s1955_s29, %s1949_s24 }
 0x4f1   : > { %p1952_p8 = pneg %p1951_p6 }
 0x4f2   : > { %p1958_p10 = por %p1957_p5, %p1956_p0 }
 0x4f4   : > { %p1959_p13 = pnand %p1958_p10, %p1952_p8 }
 0x4f6   : > { %1962 = shalt.err (!%p1959_p13)
}
 0x4f7   : > { %s1963_s7 = scalar_lea.hbm %s2575_s14, 128  ;;  %s1967_s18 = scalar_lea.hbm %s2678_s4, 256 }
 0x4f8   : > { %p1964_p9 = scmp.ne.s32.totalorder %s2575_s14, %s1963_s7  ;;  %p1968_p11 = scmp.lt.u32.totalorder %s2575_s14, %s2678_s4 }
 0x4f9   : > { %p1969_p12 = scmp.lt.u32.totalorder %s1967_s18, %s1963_s7  ;;  %p1971_p6 = scmp.lt.u32.totalorder %s1963_s7, %s2575_s14 }
 0x4fa   : > { %p1965_p3 = pnand %p1964_p9, %p2269_p2 }
 0x4fb   : > { %p1970_p1 = por %p1969_p12, %p1968_p11 }
 0x4fc   : > { %p1966_p7 = pneg %p1965_p3 }
 0x4fd   : > { %p1972_p8 = por %p1971_p6, %p1970_p1 }
 0x4ff   : > { %p1973_p0 = pnand %p1972_p8, %p1966_p7 }
 0x501   : > { %1976 = shalt.err (!%p1973_p0)
}
 0x502   : > { %s2084_s24 = smov 32   ;;  %s2085_s10 = smov 2  }
 0x503   : > { %1676 = dma.vmem_to_hbm [thread:$0]  (%p2269_p2), %s2577_s17, 128, %s2575_s14, %s1182_s16, %s2084_s24, %s2084_s24, %s2085_s10  }
 0x504   : > { %s1977_s9 = scalar_lea.vmem %s2580_s13, 32  ;;  %p1984_p9 = scmp.lt.s32.totalorder %s2580_s13, %s2580_s13 }
 0x505   : > { %p1978_p5 = scmp.ne.s32.totalorder %s2580_s13, %s1977_s9  ;;  %p1985_p3 = scmp.lt.s32.totalorder %s1977_s9, %s1977_s9 }
 0x507   : > { %p1979_p10 = pnand %p1978_p5, %p2701_p4  ;;  %p1986_p7 = por %p1985_p3, %p1984_p9 }
 0x509   : > { %p1980_p13 = pneg %p1979_p10 }
 0x50b   : > { %p1987_p11 = pnand %p1986_p7, %p1980_p13 }
 0x50d   : > { %1990 = shalt.err (!%p1987_p11)
}
 0x50e   : > { %s1991_s11 = scalar_lea.hbm %s2680_s6, 32 }
 0x50f   : > { %p1992_p2 = scmp.ne.s32.totalorder %s2680_s6, %s1991_s11  ;;  %p1997_p6 = scmp.lt.u32.totalorder %s1991_s11, %s2680_s6 }
 0x511   : > { %p1993_p12 = pnand %p1992_p2, %p2701_p4 }
 0x513   : > { %p1994_p1 = pneg %p1993_p12 }
 0x515   : > { %p1999_p8 = pnand %p1997_p6, %p1994_p1 }
 0x517   : > { %2002 = shalt.err (!%p1999_p8)
}
 0x518   : > { %1680 = dma.vmem_to_hbm [thread:$0]  (%p2701_p4), %s2580_s13, 32, %s2680_s6, [#allocation12]  }
 0x519   : > { %2040 = dma.done.wait (%p2701_p4), [#allocation12], 64  }
 0x51a   : > { %2042 = vsyncadd (%p2701_p4), [#allocation12], 4294967232 }
 0x51b PF: > { %s2702_s18 = sld [smem:[#allocation19_spill]]  ;;  %s1245_s27 = sand.u32 1, %s2049_s21  }
 0x51c   : > { %p2704_p5 = scmp.ge.s32.totalorder %s2069_s26, 2  ;;  %s1246_s15 = scalar_lea.sflag [#allocation4], %s1245_s27 }
 0x521   : > { %p2703_p0 = scmp.ne.s32.totalorder %s2702_s18, 0 }
 0x523   : > { %p1701_p10 = pnand %p2704_p5, %p2703_p0 }
 0x525   : > { %2044 = dma.done.wait (!%p1701_p10), %s1246_s15, 128  }
 0x526   : > { %2046 = vsyncadd (!%p1701_p10), %s1246_s15, 4294967168  ;;  %s26_s26 = sadd.s32 1, %s2069_s26   ;;  %s2705_s21 = smov %s2053_s22 }
 0x527   : > { %p23_p13 = scmp.ge.s32.totalorder %s26_s26, 4   ;;  %s2706_s22 = smov %s2057_s23 }
 0x528   : > { %s2707_s23 = smov %s2281_s12  ;;  %s2708_s24 = smov %s2065_s25 }
 0x529   : > { %s2709_s25 = smov %s2711_s19  ;;  %25 = sbr.rel (!%p23_p13) target bundleno = 9 (0x9), region = 123 }
 0x530   :  { %1251 = vsyncpa [#allocation3], 1 }
 0x531   :  { %1253 = vsyncpa [#allocation3 + $0x1], 1 }
 0x532   :  { %1254 = vsyncpa [#allocation6], 1 }
 0x533   :  { %1255 = vsyncpa [#allocation9], 1 }
 0x534   :  { %1256 = vsyncpa [#allocation4], 1 }
 0x535   :  { %1258 = vsyncpa [#allocation4 + $0x1], 1 }
 0x536   :  { %1259 = vsyncpa [#allocation12], 1 }

// kernel: tpu_custom_call.1
= control target key start
LH: loop header
LB: loop body
LE: loop exit
PB: predicated region body
PF: predicated region fallthrough
CT: control target
= control target key end

     0   :  { %12 = vsyncpa [#allocation3], 0  ;;  %s2674_s0 = inlined_call_operand.hbm [shape: f32[8,2,512], index: 0, kind: input, shape index: {}]   ;;  %s2675_s1 = inlined_call_operand.hbm [shape: f32[2,128], index: 1, kind: input, shape index: {}]   ;;  %s2676_s2 = inlined_call_operand.hbm [shape: f32[2,128], index: 2, kind: input, shape index: {}]   ;;  %s2677_s3 = inlined_call_operand.hbm [shape: f32[128,512], index: 3, kind: input, shape index: {}]   ;;  %s2678_s4 = inlined_call_operand.hbm [shape: f32[8,2,128], index: 4, kind: output, shape index: {0}]   ;;  %s2679_s5 = inlined_call_operand.hbm [shape: f32[2,128], index: 5, kind: output, shape index: {1}]   ;;  %s2680_s6 = inlined_call_operand.hbm [shape: f32[2,128], index: 6, kind: output, shape index: {2}]  }
   0x1   :  { %14 = vsyncpa [#allocation3 + $0x1], 0 }
   0x2   :  { %15 = vsyncpa [#allocation6], 0 }
   0x3   :  { %16 = vsyncpa [#allocation9], 0 }
   0x4   :  { %17 = vsyncpa [#allocation4], 0 }
   0x5   :  { %19 = vsyncpa [#allocation4 + $0x1], 0 }
   0x6   :  { %20 = vsyncpa [#allocation12], 0  ;;  %s2121_s21 = smov 0   ;;  %s2123_s22 = smov 0  }
   0x7   :  { %s2125_s23 = smov 0   ;;  %s2127_s24 = smov 0  }
   0x8   :  { %s2129_s25 = smov 0   ;;  %s2131_s26 = smov 0  }
   0x9 LB: > { %s1366_s27 = sadd.s32 4294967295, %s2069_s26   ;;  %s1367_s28 = sadd.s32 4294967294, %s2069_s26   ;;  %s2069_s26 = sphi %s2131_s26, %s26_s26   ;;  %s2065_s25 = sphi %s2129_s25, %s2709_s25   ;;  %s2061_s24 = sphi %s2127_s24, %s2708_s24   ;;  %s2057_s23 = sphi %s2125_s23, %s2707_s23   ;;  %s2053_s22 = sphi %s2123_s22, %s2706_s22   ;;  %s2049_s21 = sphi %s2121_s21, %s2705_s21  }
   0xa   : > { %p60_p0 = scmp.ne.s32.totalorder %s2053_s22, %s2049_s21  ;;  %p2155_p1 = scmp.eq.s32.totalorder %s1366_s27, 0 }
   0xb   : > { %p2159_p2 = scmp.eq.s32.totalorder %s1366_s27, 1  ;;  %p165_p3 = scmp.eq.s32.totalorder %s1367_s28, 1 }
   0xc   : > { %s2687_s29 = scalar_select %p2155_p1, 1, 0 }
   0xd   : > { %s2688_s30 = scalar_select %p2159_p2, 1, 0 }
   0xe   : > { %p2165_p4 = por %p2155_p1, %p60_p0  ;;  %p1368_p5 = scmp.ge.s32.totalorder %s2069_s26, 1 }
   0xf   : > { %p2170_p6 = por %p165_p3, %p60_p0  ;;  %p224_p7 = scmp.lt.s32.totalorder %s2069_s26, 3 }
  0x10   : > { %s2689_s7 = scalar_select %p2165_p4, 1, 0 }
  0x11   : > { %s2690_s8 = scalar_select %p2170_p6, 1, 0 }
  0x12   : > { %p2175_p8 = pnand %p1368_p5, %p224_p7  ;;  %s2071_s10 = smov [#allocation5]  }
  0x13   : > { %2691 = sst [smem:[#allocation19_spill]] %s2690_s8  ;;  %s239_s11 = sshll.u32 %s2071_s10, 4  ;;  %s240_s11 = int_to_ptr.vmem [resolvable:$true] %s239_s11 }
  0x14   : > { %s2692_s9 = scalar_select %p2175_p8, 1, 0 }
  0x15   : > { %p1686_p10 = pneg %p2175_p8  ;;  %s2072_s12 = smov [#allocation7]  }
  0x16   : > { %s252_s13 = sshll.u32 %s2072_s12, 4  ;;  %s2073_s15 = smov [#allocation8]   ;;  %s2188_s13 = int_to_ptr.vmem [resolvable:$true] %s252_s13 }
  0x17   : > { %p2184_p11 = pnand %p1686_p10, %p2155_p1  ;;  %s262_s16 = sshll.u32 %s2073_s15, 4  ;;  %s2190_s16 = int_to_ptr.vmem [resolvable:$true] %s262_s16 }
  0x18   : > { %s1809_s19 = scalar_lea.hbm %s2675_s1, 32 }
  0x19   : > { %p1810_p12 = scmp.ne.s32.totalorder %s2675_s1, %s1809_s19  ;;  %p2200_p13 = pneg %p2184_p11 }
  0x1a   : > { %p1816_p5 = scmp.lt.u32.totalorder %s1809_s19, %s2675_s1 }
  0x1b   : > { %p1812_p0 = pnand %p2200_p13, %p1810_p12 }
  0x1d   : > { %p1813_p3 = pneg %p1812_p0 }
  0x1f   : > { %p1818_p7 = pnand %p1816_p5, %p1813_p3 }
  0x21   : > { %1821 = shalt.err (!%p1818_p7)
}
  0x22   : > { %s1822_s15 = scalar_lea.vmem %s240_s11, 32  ;;  %p1830_p1 = scmp.lt.s32.totalorder %s240_s11, %s240_s11 }
  0x23   : > { %p1823_p10 = scmp.ne.s32.totalorder %s240_s11, %s1822_s15  ;;  %p1831_p4 = scmp.lt.s32.totalorder %s1822_s15, %s1822_s15 }
  0x25   : > { %p1825_p9 = pnand %p1823_p10, %p2200_p13  ;;  %p1832_p8 = por %p1831_p4, %p1830_p1 }
  0x27   : > { %p1826_p6 = pneg %p1825_p9 }
  0x29   : > { %p1833_p2 = pnand %p1832_p8, %p1826_p6 }
  0x2b   : > { %1836 = shalt.err (!%p1833_p2)
}
  0x2c   : > { %1689 = dma.hbm_to_vmem [thread:$0]  (!%p2184_p11), %s2675_s1, 32, %s240_s11, [#allocation6]  }
  0x2d   : > { %s1837_s27 = scalar_lea.hbm %s2676_s2, 32 }
  0x2e   : > { %p1838_p9 = scmp.ne.s32.totalorder %s2676_s2, %s1837_s27  ;;  %p1844_p2 = scmp.lt.u32.totalorder %s1837_s27, %s2676_s2 }
  0x30   : > { %p1840_p12 = pnand %p1838_p9, %p2200_p13 }
  0x32   : > { %p1841_p1 = pneg %p1840_p12 }
  0x34   : > { %p1846_p4 = pnand %p1844_p2, %p1841_p1 }
  0x36   : > { %1849 = shalt.err (!%p1846_p4)
}
  0x37   : > { %s1850_s11 = scalar_lea.vmem %s2188_s13, 32  ;;  %p1858_p3 = scmp.lt.s32.totalorder %s2188_s13, %s2188_s13 }
  0x38   : > { %p1851_p6 = scmp.ne.s32.totalorder %s2188_s13, %s1850_s11  ;;  %p1859_p5 = scmp.lt.s32.totalorder %s1850_s11, %s1850_s11 }
  0x3a   : > { %p1853_p8 = pnand %p1851_p6, %p2200_p13  ;;  %p1860_p7 = por %p1859_p5, %p1858_p3 }
  0x3c   : > { %p1854_p0 = pneg %p1853_p8 }
  0x3e   : > { %p1861_p10 = pnand %p1860_p7, %p1854_p0 }
  0x40   : > { %1864 = shalt.err (!%p1861_p10)
}
  0x41   : > { %1692 = dma.hbm_to_vmem [thread:$0]  (!%p2184_p11), %s2676_s2, 32, %s2188_s13, [#allocation6]  }
  0x42   : > { %s1865_s20 = scalar_lea.hbm %s2677_s3, 8192 }
  0x43   : > { %p1866_p9 = scmp.ne.s32.totalorder %s2677_s3, %s1865_s20  ;;  %p1872_p2 = scmp.lt.u32.totalorder %s1865_s20, %s2677_s3 }
  0x45   : > { %p1868_p12 = pnand %p1866_p9, %p2200_p13 }
  0x47   : > { %p1869_p1 = pneg %p1868_p12 }
  0x49   : > { %p1874_p4 = pnand %p1872_p2, %p1869_p1 }
  0x4b   : > { %1877 = shalt.err (!%p1874_p4)
}
  0x4c   : > { %s1878_s13 = scalar_lea.vmem %s2190_s16, 8192  ;;  %p1886_p3 = scmp.lt.s32.totalorder %s2190_s16, %s2190_s16 }
  0x4d   : > { %p1879_p6 = scmp.ne.s32.totalorder %s2190_s16, %s1878_s13  ;;  %p1887_p5 = scmp.lt.s32.totalorder %s1878_s13, %s1878_s13 }
  0x4f   : > { %p1881_p8 = pnand %p1879_p6, %p2200_p13  ;;  %p1888_p7 = por %p1887_p5, %p1886_p3 }
  0x51   : > { %p1882_p0 = pneg %p1881_p8 }
  0x53   : > { %p1889_p10 = pnand %p1888_p7, %p1882_p0 }
  0x55   : > { %1892 = shalt.err (!%p1889_p10)
}
  0x56   : > { %s2074_s11 = smov 512   ;;  %s2075_s28 = smov 32  }
  0x57   : > { %1695 = dma.hbm_to_vmem [thread:$0]  (!%p2184_p11), %s2677_s3, 8192, %s2190_s16, [#allocation9], %s2074_s11, %s2074_s11, %s2075_s28  }
  0x58   : > { %s47_s18 = sadd.s32 1, %s2057_s23  ;;  %s35_s19 = sadd.s32 1, %s2065_s25 }
  0x59   : > { %p54_p13 = scmp.ne.s32.totalorder %s2057_s23, %s2053_s22  ;;  %p36_p9 = scmp.ge.s32.totalorder %s35_s19, 2 }
  0x5a   : > { %p55_p12 = scmp.eq.s32.totalorder %s2069_s26, 0  ;;  %p2695_p1 = scmp.ne.s32.totalorder %s2688_s30, 0 }
  0x5b   : > { %p1707_p4 = scmp.lt.s32.totalorder %s2069_s26, 2  ;;  %s2711_s19 = smov (%p36_p9, %s35_s19), 0 }
  0x5c   : > { %p2269_p2 = por %p2695_p1, %p54_p13  ;;  %p56_p6 = por %p55_p12, %p54_p13 }
  0x5d   : > { %s276_s14 = sand.u32 1, %s2057_s23   ;;  %s42_s27 = ssub.s32 %s2065_s25, %s2711_s19 }
  0x5e   : > { %p45_p8 = scmp.eq.s32.totalorder %s42_s27, 0  ;;  %s1373_s16 = sshll.u32 %s276_s14, 5 }
  0x5f   : > { %s1404_s10 = sshll.u32 %s2065_s25, 9  ;;  %s280_s28 = scalar_lea.vmem [#allocation2], %s1373_s16 }
  0x60   : > { %s2281_s12 = scalar_select %p45_p8, %s2057_s23, %s47_s18  }
  0x61   : > { %s2286_s11 = scalar_lea.hbm %s2674_s0, %s1404_s10  ;;  %s290_s8 = sshll.u32 %s280_s28, 4  ;;  %s2288_s8 = int_to_ptr.vmem [resolvable:$true] %s290_s8 }
  0x62   : > { %p2292_p11 = pnand %p1707_p4, %p56_p6  ;;  %s2296_s18 = scalar_lea.sflag [#allocation3], %s276_s14 }
  0x63   : > { %s1893_s27 = scalar_lea.hbm %s2286_s11, 512  ;;  %s1898_s15 = scalar_lea.hbm %s2674_s0, 1024 }
  0x64   : > { %p1894_p0 = scmp.ne.s32.totalorder %s2286_s11, %s1893_s27  ;;  %p1895_p3 = pneg %p2292_p11 }
  0x65   : > { %p1899_p10 = scmp.lt.u32.totalorder %s2286_s11, %s2674_s0  ;;  %p1900_p13 = scmp.lt.u32.totalorder %s1898_s15, %s1893_s27 }
  0x66   : > { %p1896_p5 = pnand %p1895_p3, %p1894_p0  ;;  %p1902_p12 = scmp.lt.u32.totalorder %s1893_s27, %s2286_s11 }
  0x67   : > { %p1901_p9 = por %p1900_p13, %p1899_p10 }
  0x68   : > { %p1897_p7 = pneg %p1896_p5 }
  0x69   : > { %p1903_p1 = por %p1902_p12, %p1901_p9 }
  0x6b   : > { %p1904_p4 = pnand %p1903_p1, %p1897_p7 }
  0x6d   : > { %1907 = shalt.err (!%p1904_p4)
}
  0x6e   : > { %s1908_s14 = scalar_lea.vmem %s2288_s8, 512  ;;  %s2076_s16 = smov [#allocation2]  }
  0x6f   : > { %p1909_p6 = scmp.ne.s32.totalorder %s2288_s8, %s1908_s14  ;;  %s1913_s10 = sshll.u32 %s2076_s16, 4  ;;  %s1914_s10 = int_to_ptr.vmem [resolvable:$false] %s1913_s10 }
  0x70   : > { %s1915_s13 = scalar_lea.vmem %s1914_s10, 1024  ;;  %p1916_p5 = scmp.lt.s32.totalorder %s2288_s8, %s1914_s10 }
  0x71   : > { %p1911_p8 = pnand %p1909_p6, %p1895_p3  ;;  %p1917_p10 = scmp.lt.s32.totalorder %s1915_s13, %s1908_s14 }
  0x73   : > { %p1912_p0 = pneg %p1911_p8  ;;  %p1918_p13 = por %p1917_p10, %p1916_p5 }
  0x75   : > { %p1919_p9 = pnand %p1918_p13, %p1912_p0 }
  0x77   : > { %1922 = shalt.err (!%p1919_p9)
}
  0x78   : > { %s2077_s27 = smov 128   ;;  %s2078_s15 = smov 8  }
  0x79   : > { %1699 = dma.hbm_to_vmem [thread:$0]  (!%p2292_p11), %s2286_s11, 512, %s2288_s8, %s2296_s18, %s2077_s27, %s2077_s27, %s2078_s15  }
  0x7a   : > { %p2698_p3 = scmp.ne.s32.totalorder %s2692_s9, 0 }
  0x7b   : > { %s2327_s28 = sand.u32 (!%p2698_p3), 1, %s2053_s22   ;;  %p2699_p7 = scmp.ne.s32.totalorder (!%p2698_p3), %s2689_s7, 0 }
  0x7c   : > { %302 = sbr.rel (%p2698_p3) target bundleno = 1307 (0x51b), region = 36  ;;  %s1378_s14 = sshll.u32 (!%p2698_p3), %s2327_s28, 5 }
  0x7d   : > { %s305_s16 = scalar_lea.sflag (!%p2698_p3), [#allocation3], %s2327_s28  ;;  %s2331_s10 = scalar_lea.vmem (!%p2698_p3), [#allocation2], %s1378_s14 }
  0x83   : > { %2028 = dma.done.wait (%p2699_p7), %s305_s16, 512  }
  0x84   : > { %2030 = vsyncadd (%p2699_p7), %s305_s16, 4294966784  ;;  %p2700_p11 = scmp.ne.s32.totalorder %s2687_s29, 0 }
  0x86   : > { %2032 = dma.done.wait (%p2700_p11), [#allocation6], 64  }
  0x87   : > { %2034 = vsyncadd (%p2700_p11), [#allocation6], 4294967232 }
  0x88   : > { %2036 = dma.done.wait (%p2700_p11), [#allocation9], 8192  }
  0x89   : > { %2038 = vsyncadd (%p2700_p11), [#allocation9], 4294959104  ;;  %s1382_s9 = sshll.u32 %s2327_s28, 3  ;;  %p1383_p12 = scmp.ne.s32.totalorder %s2061_s24, 0 }
  0x8a   : > { %s2346_s11 = scalar_lea.vmem [#allocation10], %s1382_s9  ;;  %v355_v0 = vld [vmem:[#allocation5] sm:$0x3] (!%p1383_p12)  ;;  %v357_v1 = vld [vmem:[#allocation7] sm:$0x3] (!%p1383_p12) }
  0x8b   : > { %354 = sbr.rel (%p1383_p12) target bundleno = 146 (0x92), region = 56  ;;  %356 = vst [vmem:[#allocation11] sm:$0x3] (!%p1383_p12), %v355_v0  ;;  %358 = vst [vmem:[#allocation13] sm:$0x3] (!%p1383_p12), %v357_v1 }
  0x92 PF: > { %v360_v2 = vld [vmem:[#allocation8 + $0x8] sm:$0xff]  ;;  %v362_v4 = vld [vmem:[#allocation8 + $0x18] sm:$0xff]  ;;  %v359_v7 = vld [vmem:[#allocation8] sm:$0xff]  ;;  %v2079_v9 = vmov 0.0   ;;  %s2081_s29 = smov [#allocation11]   ;;  %s1405_s8 = sshll.u32 %s2061_s24, 7 }
  0x93   : > { %v364_v3 = vld [vmem:[#allocation8 + $0x28] sm:$0xff]  ;;  %v366_v6 = vld [vmem:[#allocation8 + $0x38] sm:$0xff]  ;;  %v363_v8 = vld [vmem:[#allocation8 + $0x20] sm:$0xff]  ;;  %490 = vmatprep.mubr.f32.mxu0 %v2079_v9  ;;  %561 = vmatprep.mubr.f32.mxu1 %v2079_v9  ;;  %s1212_s7 = sshll.u32 %s2081_s29, 4  ;;  %s1196_s17 = sshll.u32 %s2346_s11, 4  ;;  %s1213_s7 = int_to_ptr.vmem [resolvable:$true] %s1212_s7  ;;  %s2577_s17 = int_to_ptr.vmem [resolvable:$true] %s1196_s17 }
  0x94   : > { %v2349_v5 = vpack.c.bf16 %v364_v3, %v360_v2  ;;  %v2353_v10 = vpack.c.bf16 %v366_v6, %v362_v4  ;;  %v2355_v11 = vpack.c.bf16 %v363_v8, %v359_v7  ;;  %v361_v12 = vld [vmem:[#allocation8 + $0x10] sm:$0xff]  ;;  %v368_v14 = vld [vmem:[#allocation8 + $0x48] sm:$0xff]  ;;  %v370_v17 = vld [vmem:[#allocation8 + $0x58] sm:$0xff]  ;;  %s2082_s18 = smov [#allocation13]   ;;  %s2575_s14 = scalar_lea.hbm %s2678_s4, %s1405_s8 }
  0x95   : > { %v365_v13 = vld [vmem:[#allocation8 + $0x30] sm:$0xff]  ;;  %v372_v16 = vld [vmem:[#allocation8 + $0x68] sm:$0xff]  ;;  %v374_v18 = vld [vmem:[#allocation8 + $0x78] sm:$0xff]  ;;  %s1225_s13 = sshll.u32 %s2082_s18, 4  ;;  %s1923_s16 = scalar_lea.vmem %s1213_s7, 32  ;;  %s2580_s13 = int_to_ptr.vmem [resolvable:$true] %s1225_s13 }
  0x96   : > { %1407 = vmatprep.subr.bf16.mxu0 %v2349_v5  ;;  %v2358_v15 = vpack.c.bf16 %v365_v13, %v361_v12  ;;  %1439 = vmatprep.subr.bf16.mxu1 %v2353_v10  ;;  %v2362_v19 = vpack.c.bf16 %v372_v16, %v368_v14  ;;  %v2364_v20 = vpack.c.bf16 %v374_v18, %v370_v17  ;;  %v367_v21 = vld [vmem:[#allocation8 + $0x40] sm:$0xff]  ;;  %v369_v23 = vld [vmem:[#allocation8 + $0x50] sm:$0xff]  ;;  %v376_v26 = vld [vmem:[#allocation8 + $0x88] sm:$0xff]  ;;  %p1924_p1 = scmp.ne.s32.totalorder %s1213_s7, %s1923_s16  ;;  %p2701_p4 = scmp.ne.s32.totalorder %s2688_s30, 0 }
  0x97   : > { %1409 = vmatpush1.bf16.msra.mxu0 %v2355_v11  ;;  %v371_v22 = vld [vmem:[#allocation8 + $0x60] sm:$0xff]  ;;  %v373_v25 = vld [vmem:[#allocation8 + $0x70] sm:$0xff]  ;;  %v380_v27 = vld [vmem:[#allocation8 + $0xa8] sm:$0xff]  ;;  %p1930_p0 = scmp.lt.s32.totalorder %s1213_s7, %s1213_s7  ;;  %p1931_p5 = scmp.lt.s32.totalorder %s1923_s16, %s1923_s16 }
  0x98   : > { %1441 = vmatpush1.bf16.msra.mxu1 %v2358_v15  ;;  %v2367_v24 = vpack.c.bf16 %v371_v22, %v367_v21  ;;  %1411 = vmatprep.subr.bf16.mxu0 %v2362_v19  ;;  %v2371_v28 = vpack.c.bf16 %v373_v25, %v369_v23  ;;  %v2373_v29 = vpack.c.bf16 %v380_v27, %v376_v26  ;;  %v378_v30 = vld [vmem:[#allocation8 + $0x98] sm:$0xff]  ;;  %v375_v32 = vld [vmem:[#allocation8 + $0x80] sm:$0xff]  ;;  %v377_v35 = vld [vmem:[#allocation8 + $0x90] sm:$0xff]  ;;  %p1925_p6 = pnand %p1924_p1, %p2701_p4 }
  0x99   : > { %1443 = vmatprep.subr.bf16.mxu1 %v2364_v20  ;;  %v382_v31 = vld [vmem:[#allocation8 + $0xb8] sm:$0xff]  ;;  %v379_v34 = vld [vmem:[#allocation8 + $0xa0] sm:$0xff]  ;;  %v381_v36 = vld [vmem:[#allocation8 + $0xb0] sm:$0xff]  ;;  %p1932_p10 = por %p1931_p5, %p1930_p0 }
  0x9a   : > { %v2375_v33 = vpack.c.bf16 %v382_v31, %v378_v30  ;;  %v2378_v37 = vpack.c.bf16 %v379_v34, %v375_v32  ;;  %v384_v38 = vld [vmem:[#allocation8 + $0xc8] sm:$0xff]  ;;  %v386_v40 = vld [vmem:[#allocation8 + $0xd8] sm:$0xff]  ;;  %v2382_v41 = vpack.c.bf16 %v381_v36, %v377_v35  ;;  %v383_v44 = vld [vmem:[#allocation8 + $0xc0] sm:$0xff]  ;;  %p1926_p8 = pneg %p1925_p6 }
  0x9b   : > { %1413 = vmatpush1.bf16.msra.mxu0 %v2367_v24  ;;  %v388_v39 = vld [vmem:[#allocation8 + $0xe8] sm:$0xff]  ;;  %v390_v43 = vld [vmem:[#allocation8 + $0xf8] sm:$0xff]  ;;  %v387_v45 = vld [vmem:[#allocation8 + $0xe0] sm:$0xff] }
  0x9c   : > { %1445 = vmatpush1.bf16.msra.mxu1 %v2371_v28  ;;  %1415 = vmatprep.subr.bf16.mxu0 %v2373_v29  ;;  %v2384_v42 = vpack.c.bf16 %v388_v39, %v384_v38  ;;  %v2387_v46 = vpack.c.bf16 %v390_v43, %v386_v40  ;;  %v385_v47 = vld [vmem:[#allocation8 + $0xd0] sm:$0xff]  ;;  %v392_v49 = vld [vmem:[#allocation8 + $0x108] sm:$0xff]  ;;  %v394_v51 = vld [vmem:[#allocation8 + $0x118] sm:$0xff]  ;;  %v2390_v53 = vpack.c.bf16 %v387_v45, %v383_v44  ;;  %p1933_p13 = pnand %p1932_p10, %p1926_p8 }
  0x9d   : > { %1447 = vmatprep.subr.bf16.mxu1 %v2375_v33  ;;  %v389_v48 = vld [vmem:[#allocation8 + $0xf0] sm:$0xff]  ;;  %v396_v50 = vld [vmem:[#allocation8 + $0x128] sm:$0xff]  ;;  %v398_v52 = vld [vmem:[#allocation8 + $0x138] sm:$0xff] }
  0x9e   : > { %v2394_v54 = vpack.c.bf16 %v389_v48, %v385_v47  ;;  %v2396_v55 = vpack.c.bf16 %v396_v50, %v392_v49  ;;  %v391_v56 = vld [vmem:[#allocation8 + $0x100] sm:$0xff]  ;;  %v393_v58 = vld [vmem:[#allocation8 + $0x110] sm:$0xff]  ;;  %v2399_v59 = vpack.c.bf16 %v398_v52, %v394_v51  ;;  %v400_v61 = vld [vmem:[#allocation8 + $0x148] sm:$0xff]  ;;  %v2080_v51 = vmov 1983009808  }
  0x9f   : > { %1417 = vmatpush1.bf16.msra.mxu0 %v2378_v37  ;;  %v395_v57 = vld [vmem:[#allocation8 + $0x120] sm:$0xff]  ;;  %v397_v60 = vld [vmem:[#allocation8 + $0x130] sm:$0xff]  ;;  %v404_v62 = vld [vmem:[#allocation8 + $0x168] sm:$0xff]  ;;  %v575_v52 = vunpack.c.l.s4 %v2080_v51 }
  0xa0   : > { %1449 = vmatpush1.bf16.msra.mxu1 %v2382_v41  ;;  %1419 = vmatprep.subr.bf16.mxu0 %v2384_v42  ;;  %v402_v63 = vld [vmem:[#allocation8 + $0x158] sm:$0xff]  ;;  %v2402_v1 = vpack.c.bf16 %v395_v57, %v391_v56  ;;  %v2406_v2 = vpack.c.bf16 %v397_v60, %v393_v58  ;;  %v2408_v3 = vpack.c.bf16 %v404_v62, %v400_v61  ;;  %v399_v4 = vld [vmem:[#allocation8 + $0x140] sm:$0xff]  ;;  %v401_v7 = vld [vmem:[#allocation8 + $0x150] sm:$0xff]  ;;  %v577_v56 = vlaneseq }
  0xa1   : > { %1451 = vmatprep.subr.bf16.mxu1 %v2387_v46  ;;  %v406_v0 = vld [vmem:[#allocation8 + $0x178] sm:$0xff]  ;;  %v403_v6 = vld [vmem:[#allocation8 + $0x160] sm:$0xff]  ;;  %v405_v12 = vld [vmem:[#allocation8 + $0x170] sm:$0xff]  ;;  %v576_v57 = vunpack.c.0.s8 %v575_v52 }
  0xa2   : > { %v2411_v8 = vpack.c.bf16 %v406_v0, %v402_v63  ;;  %v408_v13 = vld [vmem:[#allocation8 + $0x188] sm:$0xff]  ;;  %v410_v16 = vld [vmem:[#allocation8 + $0x198] sm:$0xff]  ;;  %v2414_v18 = vpack.c.bf16 %v403_v6, %v399_v4  ;;  %v2418_v21 = vpack.c.bf16 %v405_v12, %v401_v7  ;;  %v407_v23 = vld [vmem:[#allocation8 + $0x180] sm:$0xff]  ;;  %v578_v58 = vshrl.u32 %v577_v56, 7 }
  0xa3   : > { %1421 = vmatpush1.bf16.msra.mxu0 %v2390_v53  ;;  %v412_v14 = vld [vmem:[#allocation8 + $0x1a8] sm:$0xff]  ;;  %v414_v17 = vld [vmem:[#allocation8 + $0x1b8] sm:$0xff]  ;;  %v411_v25 = vld [vmem:[#allocation8 + $0x1a0] sm:$0xff] }
  0xa4   : > { %1453 = vmatpush1.bf16.msra.mxu1 %v2394_v54  ;;  %1423 = vmatprep.subr.bf16.mxu0 %v2396_v55  ;;  %v2420_v22 = vpack.c.bf16 %v412_v14, %v408_v13  ;;  %v409_v26 = vld [vmem:[#allocation8 + $0x190] sm:$0xff]  ;;  %v2423_v27 = vpack.c.bf16 %v414_v17, %v410_v16  ;;  %v416_v31 = vld [vmem:[#allocation8 + $0x1c8] sm:$0xff]  ;;  %v418_v34 = vld [vmem:[#allocation8 + $0x1d8] sm:$0xff]  ;;  %v2426_v36 = vpack.c.bf16 %v411_v25, %v407_v23 }
  0xa5   : > { %1455 = vmatprep.subr.bf16.mxu1 %v2399_v59  ;;  %v413_v30 = vld [vmem:[#allocation8 + $0x1b0] sm:$0xff]  ;;  %v420_v32 = vld [vmem:[#allocation8 + $0x1e8] sm:$0xff]  ;;  %v422_v35 = vld [vmem:[#allocation8 + $0x1f8] sm:$0xff]  ;;  %v2483_v61 = vsub.s32 %v576_v57, %v578_v58 }
  0xa6   : > { %v2430_v38 = vpack.c.bf16 %v413_v30, %v409_v26  ;;  %v2432_v39 = vpack.c.bf16 %v420_v32, %v416_v31  ;;  %v415_v40 = vld [vmem:[#allocation8 + $0x1c0] sm:$0xff]  ;;  %v2435_v44 = vpack.c.bf16 %v422_v35, %v418_v34  ;;  %v417_v45 = vld [vmem:[#allocation8 + $0x1d0] sm:$0xff] }
  0xa7   : > { %1425 = vmatpush1.bf16.msra.mxu0 %v2402_v1  ;;  %v419_v43 = vld [vmem:[#allocation8 + $0x1e0] sm:$0xff]  ;;  %v421_v47 = vld [vmem:[#allocation8 + $0x1f0] sm:$0xff] }
  0xa8   : > { %1457 = vmatpush1.bf16.msra.mxu1 %v2406_v2  ;;  %1427 = vmatprep.subr.bf16.mxu0 %v2408_v3  ;;  %v2438_v48 = vpack.c.bf16 %v419_v43, %v415_v40  ;;  %v2442_v49 = vpack.c.bf16 %v421_v47, %v417_v45  ;;  %v423_v50 = vld [vmem:[#allocation11] sm:$0x3]  ;;  %v425_v13 = vld [vmem:[%s2331_s10] sm:$0xff]  ;;  %v424_v31 = vld [vmem:[#allocation13] sm:$0x3] }
  0xa9   : > { %1459 = vmatprep.subr.bf16.mxu1 %v2411_v8 }
  0xab   : > { %1429 = vmatpush1.bf16.msra.mxu0 %v2414_v18 }
  0xac   : > { %1461 = vmatpush1.bf16.msra.mxu1 %v2418_v21  ;;  %1431 = vmatprep.subr.bf16.mxu0 %v2420_v22 }
  0xad   : > { %1463 = vmatprep.subr.bf16.mxu1 %v2423_v27 }
  0xaf   : > { %1433 = vmatpush1.bf16.msra.mxu0 %v2426_v36 }
  0xb0   : > { %1465 = vmatpush1.bf16.msra.mxu1 %v2430_v38  ;;  %1435 = vmatprep.subr.bf16.mxu0 %v2432_v39 }
  0xb1   : > { %1467 = vmatprep.subr.bf16.mxu1 %v2435_v44 }
  0xb3   : > { %1437 = vmatpush1.bf16.msra.mxu0 %v2438_v48 }
  0xb4   : > { %1469 = vmatpush1.bf16.msra.mxu1 %v2442_v49  ;;  %1471 = vmatprep.subr.bf16.mxu0 %v2349_v5 }
  0xb5   : > { %1503 = vmatprep.subr.bf16.mxu1 %v2353_v10 }
  0xb6   : > { %491 = vmatmul.mubr.f32.vlgmr.msra.gmra.mrb[0].mxu0 %v423_v50 }
  0xb7   : > { %562 = vmatmul.mubr.f32.vlgmr.msra.gmra.mrb[0].mxu1 %v423_v50  ;;  %1473 = vmatpush1.bf16.msra.mxu0 %v2355_v11 }
  0xb8   : > { %1505 = vmatpush1.bf16.msra.mxu1 %v2358_v15  ;;  %1475 = vmatprep.subr.bf16.mxu0 %v2362_v19 }
  0xb9   : > { %1507 = vmatprep.subr.bf16.mxu1 %v2364_v20  ;;  %678 = vmatprep.mubr.f32.mxu0 %v2079_v9 }
  0xba   : > { %749 = vmatprep.mubr.f32.mxu1 %v2079_v9 }
  0xbb   : > { %1477 = vmatpush1.bf16.msra.mxu0 %v2367_v24 }
  0xbc   : > { %1509 = vmatpush1.bf16.msra.mxu1 %v2371_v28  ;;  %1479 = vmatprep.subr.bf16.mxu0 %v2373_v29 }
  0xbd   : > { %1511 = vmatprep.subr.bf16.mxu1 %v2375_v33 }
  0xbf   : > { %1481 = vmatpush1.bf16.msra.mxu0 %v2378_v37 }
  0xc0   : > { %1513 = vmatpush1.bf16.msra.mxu1 %v2382_v41  ;;  %1483 = vmatprep.subr.bf16.mxu0 %v2384_v42 }
  0xc1   : > { %1515 = vmatprep.subr.bf16.mxu1 %v2387_v46 }
  0xc3   : > { %1485 = vmatpush1.bf16.msra.mxu0 %v2390_v53 }
  0xc4   : > { %1517 = vmatpush1.bf16.msra.mxu1 %v2394_v54  ;;  %1487 = vmatprep.subr.bf16.mxu0 %v2396_v55 }
  0xc5   : > { %1519 = vmatprep.subr.bf16.mxu1 %v2399_v59 }
  0xc7   : > { %1489 = vmatpush1.bf16.msra.mxu0 %v2402_v1 }
  0xc8   : > { %1521 = vmatpush1.bf16.msra.mxu1 %v2406_v2  ;;  %1491 = vmatprep.subr.bf16.mxu0 %v2408_v3 }
  0xc9   : > { %1523 = vmatprep.subr.bf16.mxu1 %v2411_v8 }
  0xcb   : > { %1493 = vmatpush1.bf16.msra.mxu0 %v2414_v18 }
  0xcc   : > { %1525 = vmatpush1.bf16.msra.mxu1 %v2418_v21  ;;  %1495 = vmatprep.subr.bf16.mxu0 %v2420_v22 }
  0xcd   : > { %1527 = vmatprep.subr.bf16.mxu1 %v2423_v27 }
  0xcf   : > { %1497 = vmatpush1.bf16.msra.mxu0 %v2426_v36 }
  0xd0   : > { %1529 = vmatpush1.bf16.msra.mxu1 %v2430_v38  ;;  %1499 = vmatprep.subr.bf16.mxu0 %v2432_v39 }
  0xd1   : > { %1531 = vmatprep.subr.bf16.mxu1 %v2435_v44 }
  0xd3   : > { %1501 = vmatpush1.bf16.msra.mxu0 %v2438_v48 }
  0xd4   : > { %1533 = vmatpush1.bf16.msra.mxu1 %v2442_v49  ;;  %1535 = vmatprep.subr.bf16.mxu0 %v2349_v5 }
  0xd5   : > { %1567 = vmatprep.subr.bf16.mxu1 %v2353_v10 }
 0x189   : > { %v492_v60 = vpop.f32.mrb[0].mxu0 }
 0x18a   : > { %v563_v62 = vpop.f32.mrb[0].mxu1  ;;  %v494_v63 = vpop.f32.mrb[1].mxu0 }
 0x18b   : > { %v572_v0 = vcombine.low %v492_v60, %v494_v63  ;;  %v565_v4 = vpop.f32.mrb[1].mxu1 }
 0x18c   : > { %v573_v6 = vcombine.low %v563_v62, %v565_v4 }
 0x18d   : > { %v580_v7 = vrot.slane %v572_v0, %v2483_v61  ;;  %v1385_v0 = vld [vmem:[%s2331_s10 + $0x8] sm:$0xff] }
 0x18e   : > { %v587_v12 = vrot.slane %v573_v6, %v2483_v61 }
 0x190   : > { %v588_v14 = vcombine.low %v580_v7, %v587_v12 }
 0x192   : > { %v590_v16 = vadd.f32 %v588_v14, %v425_v13 }
 0x194   : > { %v1384_v17 = vmul.f32 -1.442695, %v590_v16  ;;  %v598_v26 = vrot.slane %v590_v16, 6 }
 0x196   : > { %1777 = vpow2.f32 %v1384_v17 }
 0x1a0   : > { %v1778_v23 = vpop.eup %1777 }
 0x1a1   : > { %v594_v25 = vadd.f32 1.0, %v1778_v23 }
 0x1a3   : > { %1779 = vrcp.f32 %v594_v25 }
 0x1a4   : > { %1781 = vtanh.f32 %v598_v26 }
 0x1ad   : > { %v1780_v30 = vpop.eup %1779 }
 0x1ae   : > { %v602_v32 = vrot.slane %v1780_v30, 2  ;;  %v1782_v34 = vpop.eup %1781  ;;  %v608_v45 = vrot.slane %v1780_v30, 4 }
 0x1af   : > { %v605_v35 = vmul.f32 %v1782_v34, %v1780_v30  ;;  %v1391_v34 = vld [vmem:[%s2331_s10 + $0x18] sm:$0xff] }
 0x1b0   : > { %v604_v40 = vmul.f32 %v602_v32, %v424_v31 }
 0x1b2   : > { %v2488_v43 = vadd.f32 %v605_v35, %v604_v40 }
 0x1b4   : > { %1783 = vtanh.f32 %v2488_v43 }
 0x1be   : > { %v1784_v47 = vpop.eup %1783 }
 0x1bf   : > { %v610_v50 = vmul.f32 %v1784_v47, %v608_v45 }
 0x1c1   : > { %611 = vst [vmem:[%s2346_s11] sm:$0x3] %v610_v50  ;;  %679 = vmatmul.mubr.f32.vlgmr.msra.gmra.mrb[2].mxu0 %v610_v50  ;;  %750 = vmatmul.mubr.f32.vlgmr.msra.gmra.mrb[2].mxu1 %v610_v50 }
 0x1c2   : > { %1537 = vmatpush1.bf16.msra.mxu0 %v2355_v11  ;;  %1569 = vmatpush1.bf16.msra.mxu1 %v2358_v15 }
 0x1c3   : > { %1539 = vmatprep.subr.bf16.mxu0 %v2362_v19  ;;  %1571 = vmatprep.subr.bf16.mxu1 %v2364_v20 }
 0x1c4   : > { %867 = vmatprep.mubr.f32.mxu0 %v2079_v9  ;;  %938 = vmatprep.mubr.f32.mxu1 %v2079_v9 }
 0x1c6   : > { %1541 = vmatpush1.bf16.msra.mxu0 %v2367_v24  ;;  %1573 = vmatpush1.bf16.msra.mxu1 %v2371_v28 }
 0x1c7   : > { %1543 = vmatprep.subr.bf16.mxu0 %v2373_v29  ;;  %1575 = vmatprep.subr.bf16.mxu1 %v2375_v33 }
 0x1ca   : > { %1545 = vmatpush1.bf16.msra.mxu0 %v2378_v37  ;;  %1577 = vmatpush1.bf16.msra.mxu1 %v2382_v41 }
 0x1cb   : > { %1547 = vmatprep.subr.bf16.mxu0 %v2384_v42  ;;  %1579 = vmatprep.subr.bf16.mxu1 %v2387_v46 }
 0x1ce   : > { %1549 = vmatpush1.bf16.msra.mxu0 %v2390_v53  ;;  %1581 = vmatpush1.bf16.msra.mxu1 %v2394_v54 }
 0x1cf   : > { %1551 = vmatprep.subr.bf16.mxu0 %v2396_v55  ;;  %1583 = vmatprep.subr.bf16.mxu1 %v2399_v59 }
 0x1d2   : > { %1553 = vmatpush1.bf16.msra.mxu0 %v2402_v1  ;;  %1585 = vmatpush1.bf16.msra.mxu1 %v2406_v2 }
 0x1d3   : > { %1555 = vmatprep.subr.bf16.mxu0 %v2408_v3  ;;  %1587 = vmatprep.subr.bf16.mxu1 %v2411_v8 }
 0x1d6   : > { %1557 = vmatpush1.bf16.msra.mxu0 %v2414_v18  ;;  %1589 = vmatpush1.bf16.msra.mxu1 %v2418_v21 }
 0x1d7   : > { %1559 = vmatprep.subr.bf16.mxu0 %v2420_v22  ;;  %1591 = vmatprep.subr.bf16.mxu1 %v2423_v27 }
 0x1da   : > { %1561 = vmatpush1.bf16.msra.mxu0 %v2426_v36  ;;  %1593 = vmatpush1.bf16.msra.mxu1 %v2430_v38 }
 0x1db   : > { %1563 = vmatprep.subr.bf16.mxu0 %v2432_v39  ;;  %1595 = vmatprep.subr.bf16.mxu1 %v2435_v44 }
 0x1de   : > { %1565 = vmatpush1.bf16.msra.mxu0 %v2438_v48  ;;  %1597 = vmatpush1.bf16.msra.mxu1 %v2442_v49 }
 0x1df   : > { %1599 = vmatprep.subr.bf16.mxu0 %v2349_v5  ;;  %1631 = vmatprep.subr.bf16.mxu1 %v2353_v10 }
 0x294   : > { %v680_v51 = vpop.f32.mrb[2].mxu0  ;;  %v751_v52 = vpop.f32.mrb[2].mxu1 }
 0x295   : > { %v682_v56 = vpop.f32.mrb[3].mxu0  ;;  %v753_v57 = vpop.f32.mrb[3].mxu1 }
 0x296   : > { %v760_v58 = vcombine.low %v680_v51, %v682_v56  ;;  %v761_v60 = vcombine.low %v751_v52, %v753_v57 }
 0x298   : > { %v768_v62 = vrot.slane %v760_v58, %v2483_v61  ;;  %v775_v63 = vrot.slane %v761_v60, %v2483_v61 }
 0x29a   : > { %v776_v4 = vcombine.low %v768_v62, %v775_v63 }
 0x29c   : > { %v778_v6 = vadd.f32 %v1385_v0, %v776_v4 }
 0x29e   : > { %v1386_v7 = vmul.f32 -1.442695, %v778_v6  ;;  %v786_v13 = vrot.slane %v778_v6, 6 }
 0x2a0   : > { %1785 = vpow2.f32 %v1386_v7 }
 0x2aa   : > { %v1786_v12 = vpop.eup %1785 }
 0x2ab   : > { %v782_v5 = vadd.f32 1.0, %v1786_v12 }
 0x2ad   : > { %1787 = vrcp.f32 %v782_v5 }
 0x2ae   : > { %1789 = vtanh.f32 %v786_v13 }
 0x2b7   : > { %v1788_v10 = vpop.eup %1787 }
 0x2b8   : > { %v790_v14 = vrot.slane %v1788_v10, 2  ;;  %v1790_v16 = vpop.eup %1789  ;;  %v796_v26 = vrot.slane %v1788_v10, 4 }
 0x2b9   : > { %v793_v17 = vmul.f32 %v1790_v16, %v1788_v10 }
 0x2ba   : > { %v792_v23 = vmul.f32 %v790_v14, %v2488_v43 }
 0x2bc   : > { %v794_v25 = vadd.f32 %v793_v17, %v792_v23 }
 0x2be   : > { %1791 = vtanh.f32 %v794_v25 }
 0x2c8   : > { %v1792_v30 = vpop.eup %1791 }
 0x2c9   : > { %v798_v31 = vmul.f32 %v1792_v30, %v796_v26 }
 0x2cb   : > { %1387 = vst [vmem:[%s2346_s11 + $0x2] sm:$0x3] %v798_v31  ;;  %868 = vmatmul.mubr.f32.vlgmr.msra.gmra.mrb[4].mxu0 %v798_v31  ;;  %939 = vmatmul.mubr.f32.vlgmr.msra.gmra.mrb[4].mxu1 %v798_v31 }
 0x2cc   : > { %1601 = vmatpush1.bf16.msra.mxu0 %v2355_v11  ;;  %1633 = vmatpush1.bf16.msra.mxu1 %v2358_v15 }
 0x2cd   : > { %1603 = vmatprep.subr.bf16.mxu0 %v2362_v19  ;;  %1635 = vmatprep.subr.bf16.mxu1 %v2364_v20 }
 0x2ce   : > { %1056 = vmatprep.mubr.f32.mxu0 %v2079_v9  ;;  %1127 = vmatprep.mubr.f32.mxu1 %v2079_v9 }
 0x2d0   : > { %1605 = vmatpush1.bf16.msra.mxu0 %v2367_v24  ;;  %1637 = vmatpush1.bf16.msra.mxu1 %v2371_v28 }
 0x2d1   : > { %1607 = vmatprep.subr.bf16.mxu0 %v2373_v29  ;;  %1639 = vmatprep.subr.bf16.mxu1 %v2375_v33  ;;  %v1388_v33 = vld [vmem:[%s2331_s10 + $0x10] sm:$0xff] }
 0x2d4   : > { %1609 = vmatpush1.bf16.msra.mxu0 %v2378_v37  ;;  %1641 = vmatpush1.bf16.msra.mxu1 %v2382_v41 }
 0x2d5   : > { %1611 = vmatprep.subr.bf16.mxu0 %v2384_v42  ;;  %1643 = vmatprep.subr.bf16.mxu1 %v2387_v46 }
 0x2d8   : > { %1613 = vmatpush1.bf16.msra.mxu0 %v2390_v53  ;;  %1645 = vmatpush1.bf16.msra.mxu1 %v2394_v54 }
 0x2d9   : > { %1615 = vmatprep.subr.bf16.mxu0 %v2396_v55  ;;  %1647 = vmatprep.subr.bf16.mxu1 %v2399_v59 }
 0x2dc   : > { %1617 = vmatpush1.bf16.msra.mxu0 %v2402_v1  ;;  %1649 = vmatpush1.bf16.msra.mxu1 %v2406_v2 }
 0x2dd   : > { %1619 = vmatprep.subr.bf16.mxu0 %v2408_v3  ;;  %1651 = vmatprep.subr.bf16.mxu1 %v2411_v8 }
 0x2e0   : > { %1621 = vmatpush1.bf16.msra.mxu0 %v2414_v18  ;;  %1653 = vmatpush1.bf16.msra.mxu1 %v2418_v21 }
 0x2e1   : > { %1623 = vmatprep.subr.bf16.mxu0 %v2420_v22  ;;  %1655 = vmatprep.subr.bf16.mxu1 %v2423_v27 }
 0x2e4   : > { %1625 = vmatpush1.bf16.msra.mxu0 %v2426_v36  ;;  %1657 = vmatpush1.bf16.msra.mxu1 %v2430_v38 }
 0x2e5   : > { %1627 = vmatprep.subr.bf16.mxu0 %v2432_v39  ;;  %1659 = vmatprep.subr.bf16.mxu1 %v2435_v44 }
 0x2e8   : > { %1629 = vmatpush1.bf16.msra.mxu0 %v2438_v48  ;;  %1661 = vmatpush1.bf16.msra.mxu1 %v2442_v49 }
 0x39e   : > { %v869_v9 = vpop.f32.mrb[4].mxu0  ;;  %v940_v11 = vpop.f32.mrb[4].mxu1 }
 0x39f   : > { %v871_v15 = vpop.f32.mrb[5].mxu0  ;;  %v942_v19 = vpop.f32.mrb[5].mxu1 }
 0x3a0   : > { %v949_v20 = vcombine.low %v869_v9, %v871_v15  ;;  %v950_v24 = vcombine.low %v940_v11, %v942_v19 }
 0x3a2   : > { %v957_v28 = vrot.slane %v949_v20, %v2483_v61  ;;  %v964_v29 = vrot.slane %v950_v24, %v2483_v61 }
 0x3a4   : > { %v965_v37 = vcombine.low %v957_v28, %v964_v29 }
 0x3a6   : > { %v967_v41 = vadd.f32 %v1388_v33, %v965_v37 }
 0x3a8   : > { %v1389_v42 = vmul.f32 -1.442695, %v967_v41  ;;  %v975_v54 = vrot.slane %v967_v41, 6 }
 0x3aa   : > { %1793 = vpow2.f32 %v1389_v42 }
 0x3b4   : > { %v1794_v46 = vpop.eup %1793 }
 0x3b5   : > { %v971_v53 = vadd.f32 1.0, %v1794_v46 }
 0x3b7   : > { %1795 = vrcp.f32 %v971_v53 }
 0x3b8   : > { %1797 = vtanh.f32 %v975_v54 }
 0x3c1   : > { %v1796_v55 = vpop.eup %1795 }
 0x3c2   : > { %v979_v59 = vrot.slane %v1796_v55, 2  ;;  %v1798_v1 = vpop.eup %1797  ;;  %v985_v18 = vrot.slane %v1796_v55, 4 }
 0x3c3   : > { %v982_v2 = vmul.f32 %v1798_v1, %v1796_v55 }
 0x3c4   : > { %v981_v3 = vmul.f32 %v979_v59, %v794_v25 }
 0x3c6   : > { %v983_v8 = vadd.f32 %v982_v2, %v981_v3 }
 0x3c8   : > { %1799 = vtanh.f32 %v983_v8 }
 0x3d2   : > { %v1800_v21 = vpop.eup %1799 }
 0x3d3   : > { %v987_v22 = vmul.f32 %v1800_v21, %v985_v18 }
 0x3d5   : > { %1390 = vst [vmem:[%s2346_s11 + $0x4] sm:$0x3] %v987_v22  ;;  %1057 = vmatmul.mubr.f32.vlgmr.msra.gmra.mrb[6].mxu0 %v987_v22  ;;  %1128 = vmatmul.mubr.f32.vlgmr.msra.gmra.mrb[6].mxu1 %v987_v22 }
 0x4a8   : > { %v1058_v27 = vpop.f32.mrb[6].mxu0  ;;  %v1129_v36 = vpop.f32.mrb[6].mxu1 }
 0x4a9   : > { %v1060_v38 = vpop.f32.mrb[7].mxu0  ;;  %v1131_v39 = vpop.f32.mrb[7].mxu1 }
 0x4aa   : > { %v1138_v44 = vcombine.low %v1058_v27, %v1060_v38  ;;  %v1139_v48 = vcombine.low %v1129_v36, %v1131_v39 }
 0x4ac   : > { %v1146_v49 = vrot.slane %v1138_v44, %v2483_v61  ;;  %v1153_v32 = vrot.slane %v1139_v48, %v2483_v61 }
 0x4ae   : > { %v1154_v35 = vcombine.low %v1146_v49, %v1153_v32 }
 0x4b0   : > { %v1156_v40 = vadd.f32 %v1391_v34, %v1154_v35 }
 0x4b2   : > { %v1392_v43 = vmul.f32 -1.442695, %v1156_v40  ;;  %v1164_v50 = vrot.slane %v1156_v40, 6 }
 0x4b4   : > { %1801 = vpow2.f32 %v1392_v43 }
 0x4be   : > { %v1802_v45 = vpop.eup %1801 }
 0x4bf   : > { %v1160_v47 = vadd.f32 1.0, %v1802_v45 }
 0x4c1   : > { %1803 = vrcp.f32 %v1160_v47 }
 0x4c2   : > { %1805 = vtanh.f32 %v1164_v50 }
 0x4cb   : > { %v1804_v51 = vpop.eup %1803 }
 0x4cc   : > { %v1168_v52 = vrot.slane %v1804_v51, 2  ;;  %v1806_v56 = vpop.eup %1805  ;;  %v1174_v61 = vrot.slane %v1804_v51, 4 }
 0x4cd   : > { %v1171_v58 = vmul.f32 %v1806_v56, %v1804_v51 }
 0x4ce   : > { %v1170_v57 = vmul.f32 %v1168_v52, %v983_v8 }
 0x4d0   : > { %v1172_v60 = vadd.f32 %v1171_v58, %v1170_v57 }
 0x4d2   : > { %1807 = vtanh.f32 %v1172_v60  ;;  %1180 = vst [vmem:[#allocation13] sm:$0x3] %v1172_v60 }
 0x4dc   : > { %v1808_v62 = vpop.eup %1807 }
 0x4dd   : > { %v1176_v63 = vmul.f32 %v1808_v62, %v1174_v61 }
 0x4df   : > { %1393 = vst [vmem:[%s2346_s11 + $0x6] sm:$0x3] %v1176_v63  ;;  %1179 = vst [vmem:[#allocation11] sm:$0x3] %v1176_v63 }
 0x4e0   : > { %1936 = shalt.err (!%p1933_p13)
}
 0x4e1   : > { %s1937_s9 = scalar_lea.hbm %s2679_s5, 32 }
 0x4e2   : > { %p1938_p9 = scmp.ne.s32.totalorder %s2679_s5, %s1937_s9  ;;  %p1943_p11 = scmp.lt.u32.totalorder %s1937_s9, %s2679_s5 }
 0x4e4   : > { %p1939_p3 = pnand %p1938_p9, %p2701_p4 }
 0x4e6   : > { %p1940_p7 = pneg %p1939_p3 }
 0x4e8   : > { %p1945_p12 = pnand %p1943_p11, %p1940_p7 }
 0x4ea   : > { %1948 = shalt.err (!%p1945_p12)
}
 0x4eb   : > { %1678 = dma.vmem_to_hbm [thread:$0]  (%p2701_p4), %s1213_s7, 32, %s2679_s5, [#allocation12]  }
 0x4ec   : > { %s1182_s16 = scalar_lea.sflag [#allocation4], %s2327_s28  ;;  %s1949_s24 = scalar_lea.vmem %s2577_s17, 128 }
 0x4ed   : > { %p1950_p1 = scmp.ne.s32.totalorder %s2577_s17, %s1949_s24  ;;  %s2083_s10 = smov [#allocation10]  }
 0x4ee   : > { %s1953_s9 = sshll.u32 %s2083_s10, 4  ;;  %s1954_s9 = int_to_ptr.vmem [resolvable:$false] %s1953_s9 }
 0x4ef   : > { %p1951_p6 = pnand %p1950_p1, %p2269_p2  ;;  %s1955_s29 = scalar_lea.vmem %s1954_s9, 256 }
 0x4f0   : > { %p1956_p0 = scmp.lt.s32.totalorder %s2577_s17, %s1954_s9  ;;  %p1957_p5 = scmp.lt.s32.totalorder %s1955_s29, %s1949_s24 }
 0x4f1   : > { %p1952_p8 = pneg %p1951_p6 }
 0x4f2   : > { %p1958_p10 = por %p1957_p5, %p1956_p0 }
 0x4f4   : > { %p1959_p13 = pnand %p1958_p10, %p1952_p8 }
 0x4f6   : > { %1962 = shalt.err (!%p1959_p13)
}
 0x4f7   : > { %s1963_s7 = scalar_lea.hbm %s2575_s14, 128  ;;  %s1967_s18 = scalar_lea.hbm %s2678_s4, 256 }
 0x4f8   : > { %p1964_p9 = scmp.ne.s32.totalorder %s2575_s14, %s1963_s7  ;;  %p1968_p11 = scmp.lt.u32.totalorder %s2575_s14, %s2678_s4 }
 0x4f9   : > { %p1969_p12 = scmp.lt.u32.totalorder %s1967_s18, %s1963_s7  ;;  %p1971_p6 = scmp.lt.u32.totalorder %s1963_s7, %s2575_s14 }
 0x4fa   : > { %p1965_p3 = pnand %p1964_p9, %p2269_p2 }
 0x4fb   : > { %p1970_p1 = por %p1969_p12, %p1968_p11 }
 0x4fc   : > { %p1966_p7 = pneg %p1965_p3 }
 0x4fd   : > { %p1972_p8 = por %p1971_p6, %p1970_p1 }
 0x4ff   : > { %p1973_p0 = pnand %p1972_p8, %p1966_p7 }
 0x501   : > { %1976 = shalt.err (!%p1973_p0)
}
 0x502   : > { %s2084_s24 = smov 32   ;;  %s2085_s10 = smov 2  }
 0x503   : > { %1676 = dma.vmem_to_hbm [thread:$0]  (%p2269_p2), %s2577_s17, 128, %s2575_s14, %s1182_s16, %s2084_s24, %s2084_s24, %s2085_s10  }
 0x504   : > { %s1977_s9 = scalar_lea.vmem %s2580_s13, 32  ;;  %p1984_p9 = scmp.lt.s32.totalorder %s2580_s13, %s2580_s13 }
 0x505   : > { %p1978_p5 = scmp.ne.s32.totalorder %s2580_s13, %s1977_s9  ;;  %p1985_p3 = scmp.lt.s32.totalorder %s1977_s9, %s1977_s9 }
 0x507   : > { %p1979_p10 = pnand %p1978_p5, %p2701_p4  ;;  %p1986_p7 = por %p1985_p3, %p1984_p9 }
 0x509   : > { %p1980_p13 = pneg %p1979_p10 }
 0x50b   : > { %p1987_p11 = pnand %p1986_p7, %p1980_p13 }
 0x50d   : > { %1990 = shalt.err (!%p1987_p11)
}
 0x50e   : > { %s1991_s11 = scalar_lea.hbm %s2680_s6, 32 }
 0x50f   : > { %p1992_p2 = scmp.ne.s32.totalorder %s2680_s6, %s1991_s11  ;;  %p1997_p6 = scmp.lt.u32.totalorder %s1991_s11, %s2680_s6 }
 0x511   : > { %p1993_p12 = pnand %p1992_p2, %p2701_p4 }
 0x513   : > { %p1994_p1 = pneg %p1993_p12 }
 0x515   : > { %p1999_p8 = pnand %p1997_p6, %p1994_p1 }
 0x517   : > { %2002 = shalt.err (!%p1999_p8)
}
 0x518   : > { %1680 = dma.vmem_to_hbm [thread:$0]  (%p2701_p4), %s2580_s13, 32, %s2680_s6, [#allocation12]  }
 0x519   : > { %2040 = dma.done.wait (%p2701_p4), [#allocation12], 64  }
 0x51a   : > { %2042 = vsyncadd (%p2701_p4), [#allocation12], 4294967232 }
 0x51b PF: > { %s2702_s18 = sld [smem:[#allocation19_spill]]  ;;  %s1245_s27 = sand.u32 1, %s2049_s21  }
 0x51c   : > { %p2704_p5 = scmp.ge.s32.totalorder %s2069_s26, 2  ;;  %s1246_s15 = scalar_lea.sflag [#allocation4], %s1245_s27 }
 0x521   : > { %p2703_p0 = scmp.ne.s32.totalorder %s2702_s18, 0 }
 0x523   : > { %p1701_p10 = pnand %p2704_p5, %p2703_p0 }
 0x525   : > { %2044 = dma.done.wait (!%p1701_p10), %s1246_s15, 128  }
 0x526   : > { %2046 = vsyncadd (!%p1701_p10), %s1246_s15, 4294967168  ;;  %s26_s26 = sadd.s32 1, %s2069_s26   ;;  %s2705_s21 = smov %s2053_s22 }
 0x527   : > { %p23_p13 = scmp.ge.s32.totalorder %s26_s26, 4   ;;  %s2706_s22 = smov %s2057_s23 }
 0x528   : > { %s2707_s23 = smov %s2281_s12  ;;  %s2708_s24 = smov %s2065_s25 }
 0x529   : > { %s2709_s25 = smov %s2711_s19  ;;  %25 = sbr.rel (!%p23_p13) target bundleno = 9 (0x9), region = 123 }
 0x530   :  { %1251 = vsyncpa [#allocation3], 1 }
 0x531   :  { %1253 = vsyncpa [#allocation3 + $0x1], 1 }
 0x532   :  { %1254 = vsyncpa [#allocation6], 1 }
 0x533   :  { %1255 = vsyncpa [#allocation9], 1 }
 0x534   :  { %1256 = vsyncpa [#allocation4], 1 }
 0x535   :  { %1258 = vsyncpa [#allocation4 + $0x1], 1 }
 0x536   :  { %1259 = vsyncpa [#allocation12], 1 }

</bundles_post_ra>
